<compile_context>
chip_gen: v7x
topology: tpu7x:2x2x1
jax: 0.10.0
libtpu: 0.0.40
codegen_flags: <defaults>
</compile_context>

<pallas_src>
import jax
import jax.numpy as jnp
from jax.experimental import pallas as pl
from jax.experimental.pallas import tpu as pltpu

NEG = -1e30


def _round_up(x, m):
    return ((x + m - 1) // m) * m


def crf_kernel(lens_ref, tags_ref, lstm_ref,
               trans_ref, exp_trans_ref, start_row_ref, end_col_ref, tmax_ref,
               unlab_ref, lab_ref,
               alpha, last_alpha, prev_oh, lab_acc):
    c = pl.program_id(1)                      # time-chunk index (inner, sequential)
    num_chunks = pl.num_programs(1)
    TC, Bb, Lp = lstm_ref.shape

    lens = lens_ref[...]                      # (Bb, 1) int32 (0 for padded rows)
    trans = trans_ref[...]                    # (Lp, Lp) log-space transitions
    exp_trans = exp_trans_ref[...]            # (Lp, Lp) = exp(trans - tmax)
    start_row = start_row_ref[...]            # (1, Lp)  = trans[start_idx, :]
    end_col = end_col_ref[...]                # (1, Lp)  = trans[:, end_idx]
    tmax = tmax_ref[...]                      # (1, 1)
    lane_ids = jax.lax.broadcasted_iota(jnp.int32, (Bb, Lp), 1)
    valid = lens > 0                          # (Bb, 1) real (non-padded) batch rows

    @pl.when(c == 0)
    def _init():
        alpha[...] = jnp.zeros_like(alpha)
        last_alpha[...] = jnp.zeros_like(last_alpha)
        prev_oh[...] = jnp.zeros_like(prev_oh)
        lab_acc[...] = jnp.zeros_like(lab_acc)

    def step(s, carry):
        t = c * TC + s                        # global time index
        emit = lstm_ref[s]                    # (Bb, Lp) emissions at time t
        tag = tags_ref[s]                     # (Bb, 1) int32 gold tag at time t
        cur_oh = (lane_ids == tag).astype(jnp.float32)      # (Bb, Lp)

        is_last = (lens - 1) == t                              # (Bb, 1)
        mask_mid = jnp.logical_and(t < lens, t > 0).astype(jnp.float32)  # (Bb, 1)

        # ---- forward recursion (unlabeled), exp-space on the MXU ----
        a_prev = alpha[...]
        m_b = jnp.max(a_prev, axis=1, keepdims=True)           # (Bb, 1)
        p = jnp.exp(a_prev - m_b)                               # (Bb, Lp)
        z = jnp.dot(p, exp_trans, preferred_element_type=jnp.float32)  # MXU
        z = jnp.maximum(z, 1e-37)                               # avoid log(0)
        a_recur = emit + m_b + tmax + jnp.log(z)                # (Bb, Lp)
        a_init = start_row + emit                               # (Bb, Lp), t == 0
        a_new = jnp.where(t == 0, a_init, a_recur)
        alpha[...] = a_new
        last_alpha[...] = jnp.where(is_last, a_new, last_alpha[...])

        # ---- labeled (gold path) score pieces ----
        # begin (t == 0, unmasked as in the reference): trans[start, tag0] + emit
        begin_b = jnp.sum(cur_oh * (start_row + emit), axis=1, keepdims=True)
        # middle (t >= 1): mask * (trans[tag_{t-1}, tag_t] + emit[tag_t])
        tprev = jnp.dot(prev_oh[...], trans,
                        preferred_element_type=jnp.float32)     # (Bb, Lp) MXU
        mid_b = jnp.sum(cur_oh * (emit + tprev), axis=1, keepdims=True)
        # end: trans[tag_{len-1}, end_idx], added at each row's last valid step
        end_b = jnp.sum(cur_oh * end_col, axis=1, keepdims=True)

        contrib = jnp.where(t == 0, jnp.where(valid, begin_b, 0.0),
                            mask_mid * mid_b)
        contrib = contrib + jnp.where(is_last, end_b, 0.0)
        lab_acc[...] = lab_acc[...] + contrib
        prev_oh[...] = cur_oh
        return carry

    jax.lax.fori_loop(0, TC, step, 0, unroll=True)

    @pl.when(c == num_chunks - 1)
    def _finalize():
        la = last_alpha[...] + end_col                          # (Bb, Lp)
        m2 = jnp.max(la, axis=1, keepdims=True)
        lse = m2 + jnp.log(jnp.sum(jnp.exp(la - m2), axis=1, keepdims=True))
        lse = jnp.where(valid, lse, 0.0)
        unlab_ref[...] = jnp.sum(lse).reshape(1, 1, 1)
        lab_ref[...] = jnp.sum(lab_acc[...]).reshape(1, 1, 1)


def crf_forward(transition, lstm_scores, word_seq_lens, tags, mask,
                start_idx, end_idx):
    """Returns (unlabeled_score, labeled_score) of the LinearCRF forward pass.

    NOTE: mask is assumed to equal (arange(T) < word_seq_lens); it is derived
    in-kernel from word_seq_lens (per perf review) rather than streamed.
    """
    del mask  # derived in-kernel from word_seq_lens
    B, T, L = lstm_scores.shape

    # --- padding / tiling choices ---
    L_pad = _round_up(L, 128)                     # lane-dense label dim
    B_BLOCK = min(64, _round_up(B, 8))            # sublane-aligned batch block
    B_pad = _round_up(B, B_BLOCK)
    TC = min(16, T)                               # time steps per grid iteration
    T_pad = _round_up(T, TC)
    NB = B_pad // B_BLOCK
    NC = T_pad // TC

    trans = transition.astype(jnp.float32)
    trans_p = jnp.full((L_pad, L_pad), NEG, jnp.float32).at[:L, :L].set(trans)
    tmax = jnp.max(trans).reshape(1, 1).astype(jnp.float32)
    exp_trans = jnp.exp(trans_p - tmax)           # hoisted; -1e30 pads -> exactly 0
    start_row = jnp.full((1, L_pad), NEG, jnp.float32).at[0, :L].set(trans[start_idx, :])
    end_col = jnp.full((1, L_pad), NEG, jnp.float32).at[0, :L].set(trans[:, end_idx])

    # TODO(synk): emissions could be streamed as bfloat16 (halve HBM traffic on
    # v5e/v6e) and upcast in-kernel; kept f32 for exact parity with the reference.
    lstm_tm = jnp.zeros((T_pad, B_pad, L_pad), jnp.float32)
    lstm_tm = lstm_tm.at[:T, :B, :L].set(
        jnp.transpose(lstm_scores, (1, 0, 2)).astype(jnp.float32))
    tags_tm = jnp.zeros((T_pad, B_pad, 1), jnp.int32)
    tags_tm = tags_tm.at[:T, :B, 0].set(jnp.transpose(tags.astype(jnp.int32), (1, 0)))
    lens_p = jnp.zeros((B_pad, 1), jnp.int32)
    lens_p = lens_p.at[:B, 0].set(word_seq_lens.astype(jnp.int32))

    unlab_p, lab_p = pl.pallas_call(
        crf_kernel,
        out_shape=(jax.ShapeDtypeStruct((NB, 1, 1), jnp.float32),
                   jax.ShapeDtypeStruct((NB, 1, 1), jnp.float32)),
        grid_spec=pltpu.PrefetchScalarGridSpec(
            num_scalar_prefetch=0,
            grid=(NB, NC),
            in_specs=[
                pl.BlockSpec((B_BLOCK, 1), lambda nb, c: (nb, 0)),            # lens
                pl.BlockSpec((TC, B_BLOCK, 1), lambda nb, c: (c, nb, 0)),     # tags
                pl.BlockSpec((TC, B_BLOCK, L_pad), lambda nb, c: (c, nb, 0)), # emissions
                pl.BlockSpec((L_pad, L_pad), lambda nb, c: (0, 0)),           # trans
                pl.BlockSpec((L_pad, L_pad), lambda nb, c: (0, 0)),           # exp(trans)
                pl.BlockSpec((1, L_pad), lambda nb, c: (0, 0)),               # trans[start,:]
                pl.BlockSpec((1, L_pad), lambda nb, c: (0, 0)),               # trans[:,end]
                pl.BlockSpec((1, 1), lambda nb, c: (0, 0)),                   # max(trans)
            ],
            out_specs=[
                pl.BlockSpec((1, 1, 1), lambda nb, c: (nb, 0, 0)),
                pl.BlockSpec((1, 1, 1), lambda nb, c: (nb, 0, 0)),
            ],
            scratch_shapes=[
                pltpu.VMEM((B_BLOCK, L_pad), jnp.float32),   # alpha
                pltpu.VMEM((B_BLOCK, L_pad), jnp.float32),   # last_alpha
                pltpu.VMEM((B_BLOCK, L_pad), jnp.float32),   # prev-tag one-hot
                pltpu.VMEM((B_BLOCK, 1), jnp.float32),       # per-batch labeled acc
            ],
        ),
        compiler_params=pltpu.CompilerParams(
            dimension_semantics=("parallel", "arbitrary")),
    )(lens_p, tags_tm, lstm_tm, trans_p, exp_trans, start_row, end_col, tmax)

    return jnp.sum(unlab_p), jnp.sum(lab_p)


def ref_forward(trans, lstm, lens, tags, mask_bool, start_idx, end_idx):
    """Pure-JAX reference mirroring the PyTorch module."""
    B, T, L = lstm.shape
    all_scores = trans[None, None, :, :] + lstm[:, :, None, :]
    alpha = all_scores[:, 0, start_idx, :]
    alphas = [alpha]
    for t in range(1, T):
        before = alpha[:, :, None] + all_scores[:, t]
        alpha = jax.scipy.special.logsumexp(before, axis=1)
        alphas.append(alpha)
    alphas = jnp.stack(alphas, axis=1)
    last_alpha = jnp.take_along_axis(alphas, (lens - 1)[:, None, None], axis=1)[:, 0, :]
    last_alpha = last_alpha + trans[:, end_idx][None, :]
    unlab = jnp.sum(jax.scipy.special.logsumexp(last_alpha, axis=1))

    emit_at = jnp.take_along_axis(lstm, tags[:, :, None], axis=2)[:, :, 0]
    trans_mid = trans[tags[:, :-1], tags[:, 1:]]
    begin = trans[start_idx, tags[:, 0]] + emit_at[:, 0]
    middle = jnp.sum(jnp.where(mask_bool[:, 1:], trans_mid + emit_at[:, 1:], 0.0))
    end_tags = jnp.take_along_axis(tags, (lens - 1)[:, None], axis=1)[:, 0]
    end = trans[end_tags, end_idx]
    lab = jnp.sum(begin) + jnp.sum(end) + middle
    return unlab, lab


if __name__ == "__main__":
    START_TAG, STOP_TAG, PAD = "<START>", "<STOP>", "<PAD>"
    labels = ["O", "B-PER", "I-PER", "E-PER", "S-PER",
              "B-LOC", "I-LOC", "E-LOC", "S-LOC", START_TAG, STOP_TAG, PAD]
    label2idx = {l: i for i, l in enumerate(labels)}
    L = len(labels)
    start_idx, end_idx, pad_idx = (label2idx[START_TAG], label2idx[STOP_TAG],
                                   label2idx[PAD])

    B, T = 4, 8
    key = jax.random.PRNGKey(0)
    k1, k2, k3 = jax.random.split(key, 3)

    # Deterministic "parameter" init matching the module's __init__ masking.
    trans = jax.random.normal(k1, (L, L), dtype=jnp.float32)
    trans = trans.at[:, start_idx].set(-10000.0)
    trans = trans.at[end_idx, :].set(-10000.0)
    trans = trans.at[:, pad_idx].set(-10000.0)
    trans = trans.at[pad_idx, :].set(-10000.0)
    # TODO(synk): add_iobes_constraint path (pure Python table edits at init) not exercised.

    lstm_scores = jax.random.normal(k2, (B, T, L), dtype=jnp.float32)
    word_seq_lens = jnp.array([8, 5, 3, 1], dtype=jnp.int32)
    mask = jnp.arange(T)[None, :] < word_seq_lens[:, None]
    tags = jax.random.randint(k3, (B, T), 0, 9)        # only real (non-special) labels
    tags = jnp.where(mask, tags, 0).astype(jnp.int32)

    unlab, lab = crf_forward(trans, lstm_scores, word_seq_lens, tags, mask,
                             start_idx, end_idx)
    jax.block_until_ready((unlab, lab))

    r_unlab, r_lab = ref_forward(trans, lstm_scores, word_seq_lens, tags, mask,
                                 start_idx, end_idx)
    assert jnp.allclose(unlab, r_unlab, rtol=1e-4, atol=1e-3), (unlab, r_unlab)
    assert jnp.allclose(lab, r_lab, rtol=1e-4, atol=1e-3), (lab, r_lab)
    print("KERNEL_OK")
</pallas_src>

<mosaic_0001>
module attributes {stable_mosaic.version = 11 : i64} {
  func.func @crf_kernel(%arg0: i32, %arg1: i32, %arg2: memref<8x1xi32, #tpu.memory_space<vmem>>, %arg3: memref<8x8x1xi32, #tpu.memory_space<vmem>>, %arg4: memref<8x8x128xf32, #tpu.memory_space<vmem>>, %arg5: memref<128x128xf32, #tpu.memory_space<vmem>>, %arg6: memref<128x128xf32, #tpu.memory_space<vmem>>, %arg7: memref<1x128xf32, #tpu.memory_space<vmem>>, %arg8: memref<1x128xf32, #tpu.memory_space<vmem>>, %arg9: memref<1x1xf32, #tpu.memory_space<vmem>>, %arg10: memref<1x1x1xf32, #tpu.memory_space<vmem>>, %arg11: memref<1x1x1xf32, #tpu.memory_space<vmem>>, %arg12: memref<8x128xf32, #tpu.memory_space<vmem>>, %arg13: memref<8x128xf32, #tpu.memory_space<vmem>>, %arg14: memref<8x128xf32, #tpu.memory_space<vmem>>, %arg15: memref<8x1xf32, #tpu.memory_space<vmem>>) attributes {dimension_semantics = [#tpu.dimension_semantics<parallel>, #tpu.dimension_semantics<arbitrary>], iteration_bounds = array<i64: 1, 1>, scalar_prefetch = 0 : i64, scratch_operands = 4 : i64, tpu.core_type = #tpu.core_type<tc>, window_params = [{transform_indices = @transform_0, window_bounds = array<i64: 8, 1>}, {transform_indices = @transform_1, window_bounds = array<i64: 8, 8, 1>}, {transform_indices = @transform_2, window_bounds = array<i64: 8, 8, 128>}, {pipeline_mode = #tpu.pipeline_mode<synchronous>, transform_indices = @transform_3, window_bounds = array<i64: 128, 128>}, {pipeline_mode = #tpu.pipeline_mode<synchronous>, transform_indices = @transform_4, window_bounds = array<i64: 128, 128>}, {pipeline_mode = #tpu.pipeline_mode<synchronous>, transform_indices = @transform_5, window_bounds = array<i64: 1, 128>}, {pipeline_mode = #tpu.pipeline_mode<synchronous>, transform_indices = @transform_6, window_bounds = array<i64: 1, 128>}, {pipeline_mode = #tpu.pipeline_mode<synchronous>, transform_indices = @transform_7, window_bounds = array<i64: 1, 1>}, {transform_indices = @transform_8, window_bounds = array<i64: 1, 1, 1>}, {transform_indices = @transform_9, window_bounds = array<i64: 1, 1, 1>}]} {
    %c0 = arith.constant 0 : index
    %c0_0 = arith.constant 0 : index
    %0 = vector.load %arg2[%c0, %c0_0] : memref<8x1xi32, #tpu.memory_space<vmem>>, vector<8x1xi32>
    %c0_1 = arith.constant 0 : index
    %c0_2 = arith.constant 0 : index
    %1 = vector.load %arg5[%c0_1, %c0_2] : memref<128x128xf32, #tpu.memory_space<vmem>>, vector<128x128xf32>
    %c0_3 = arith.constant 0 : index
    %c0_4 = arith.constant 0 : index
    %2 = vector.load %arg6[%c0_3, %c0_4] : memref<128x128xf32, #tpu.memory_space<vmem>>, vector<128x128xf32>
    %c0_5 = arith.constant 0 : index
    %c0_6 = arith.constant 0 : index
    %3 = vector.load %arg7[%c0_5, %c0_6] : memref<1x128xf32, #tpu.memory_space<vmem>>, vector<1x128xf32>
    %c0_7 = arith.constant 0 : index
    %c0_8 = arith.constant 0 : index
    %4 = vector.load %arg8[%c0_7, %c0_8] : memref<1x128xf32, #tpu.memory_space<vmem>>, vector<1x128xf32>
    %c0_9 = arith.constant 0 : index
    %c0_10 = arith.constant 0 : index
    %5 = vector.load %arg9[%c0_9, %c0_10] : memref<1x1xf32, #tpu.memory_space<vmem>>, vector<1x1xf32>
    %6 = tpu.iota {dimensions = array<i32: 1>} : vector<8x128xi32>
    %c0_i32 = arith.constant 0 : i32
    %7 = vector.broadcast %c0_i32 : i32 to vector<8x1xi32>
    %8 = arith.cmpi sgt, %0, %7 : vector<8x1xi32>
    %c0_i32_11 = arith.constant 0 : i32
    %9 = arith.cmpi eq, %arg1, %c0_i32_11 : i32
    %10 = arith.extui %9 : i1 to i32
    %c0_i32_12 = arith.constant 0 : i32
    %11 = arith.cmpi ne, %10, %c0_i32_12 : i32
    scf.if %11 {
      %cst_287 = arith.constant 0.000000e+00 : f32
      %615 = vector.broadcast %cst_287 : f32 to vector<8x128xf32>
      %c0_288 = arith.constant 0 : index
      %c0_289 = arith.constant 0 : index
      %616 = vector.load %arg12[%c0_288, %c0_289] : memref<8x128xf32, #tpu.memory_space<vmem>>, vector<8x128xf32>
      tpu.vector_store %arg12[%c0_288, %c0_289], %615 {strides = array<i32>} : memref<8x128xf32, #tpu.memory_space<vmem>>, vector<8x128xf32>,
      %cst_290 = arith.constant 0.000000e+00 : f32
      %617 = vector.broadcast %cst_290 : f32 to vector<8x128xf32>
      %c0_291 = arith.constant 0 : index
      %c0_292 = arith.constant 0 : index
      %618 = vector.load %arg13[%c0_291, %c0_292] : memref<8x128xf32, #tpu.memory_space<vmem>>, vector<8x128xf32>
      tpu.vector_store %arg13[%c0_291, %c0_292], %617 {strides = array<i32>} : memref<8x128xf32, #tpu.memory_space<vmem>>, vector<8x128xf32>,
      %cst_293 = arith.constant 0.000000e+00 : f32
      %619 = vector.broadcast %cst_293 : f32 to vector<8x128xf32>
      %c0_294 = arith.constant 0 : index
      %c0_295 = arith.constant 0 : index
      %620 = vector.load %arg14[%c0_294, %c0_295] : memref<8x128xf32, #tpu.memory_space<vmem>>, vector<8x128xf32>
      tpu.vector_store %arg14[%c0_294, %c0_295], %619 {strides = array<i32>} : memref<8x128xf32, #tpu.memory_space<vmem>>, vector<8x128xf32>,
      %cst_296 = arith.constant 0.000000e+00 : f32
      %621 = vector.broadcast %cst_296 : f32 to vector<8x1xf32>
      %c0_297 = arith.constant 0 : index
      %c0_298 = arith.constant 0 : index
      %622 = vector.load %arg15[%c0_297, %c0_298] : memref<8x1xf32, #tpu.memory_space<vmem>>, vector<8x1xf32>
      tpu.vector_store %arg15[%c0_297, %c0_298], %621 {strides = array<i32>} : memref<8x1xf32, #tpu.memory_space<vmem>>, vector<8x1xf32>,
    } else {
    }
    %c0_i32_13 = arith.constant 0 : i32
    %c8_i32 = arith.constant 8 : i32
    %12 = arith.muli %arg1, %c8_i32 : i32
    %13 = arith.addi %12, %c0_i32_13 : i32
    %14 = arith.index_cast %c0_i32_13 : i32 to index
    %c0_14 = arith.constant 0 : index
    %c0_15 = arith.constant 0 : index
    %15 = vector.load %arg4[%14, %c0_14, %c0_15] : memref<8x8x128xf32, #tpu.memory_space<vmem>>, vector<1x8x128xf32>
    %16 = vector.shape_cast %15 : vector<1x8x128xf32> to vector<8x128xf32>
    %17 = arith.index_cast %c0_i32_13 : i32 to index
    %c0_16 = arith.constant 0 : index
    %c0_17 = arith.constant 0 : index
    %18 = vector.load %arg3[%17, %c0_16, %c0_17] : memref<8x8x1xi32, #tpu.memory_space<vmem>>, vector<1x8x1xi32>
    %19 = vector.shape_cast %18 : vector<1x8x1xi32> to vector<8x1xi32>
    %20 = vector.broadcast %19 : vector<8x1xi32> to vector<8x128xi32>
    %21 = arith.cmpi eq, %6, %20 : vector<8x128xi32>
    %22 = arith.extui %21 : vector<8x128xi1> to vector<8x128xi32>
    %23 = arith.sitofp %22 : vector<8x128xi32> to vector<8x128xf32>
    %c1_i32 = arith.constant 1 : i32
    %24 = vector.broadcast %c1_i32 : i32 to vector<8x1xi32>
    %25 = arith.subi %0, %24 : vector<8x1xi32>
    %26 = vector.broadcast %13 : i32 to vector<8x1xi32>
    %27 = arith.cmpi eq, %25, %26 : vector<8x1xi32>
    %28 = vector.broadcast %13 : i32 to vector<8x1xi32>
    %29 = arith.cmpi slt, %28, %0 : vector<8x1xi32>
    %c0_i32_18 = arith.constant 0 : i32
    %30 = arith.cmpi sgt, %13, %c0_i32_18 : i32
    %31 = vector.broadcast %30 : i1 to vector<8x1xi1>
    %32 = arith.andi %29, %31 : vector<8x1xi1>
    %33 = arith.extui %32 : vector<8x1xi1> to vector<8x1xi32>
    %34 = arith.sitofp %33 : vector<8x1xi32> to vector<8x1xf32>
    %c0_19 = arith.constant 0 : index
    %c0_20 = arith.constant 0 : index
    %35 = vector.load %arg12[%c0_19, %c0_20] : memref<8x128xf32, #tpu.memory_space<vmem>>, vector<8x128xf32>
    %cst = arith.constant dense<0xFF800000> : vector<8xf32>
    %36 = vector.multi_reduction <maximumf>, %35, %cst [1] : vector<8x128xf32> to vector<8xf32>
    %37 = vector.shape_cast %36 : vector<8xf32> to vector<8x1xf32>
    %38 = vector.broadcast %37 : vector<8x1xf32> to vector<8x128xf32>
    %39 = arith.subf %35, %38 : vector<8x128xf32>
    %40 = math.exp %39 : vector<8x128xf32>
    %cst_21 = arith.constant dense<0.000000e+00> : vector<8x128xf32>
    %41 = tpu.matmul %40, %2, %cst_21 {dimension_numbers = #tpu.dot_dimension_numbers<[1], [0], [0], [1], [0, 0, 1, 1], [], []>} : vector<8x128xf32>, vector<128x128xf32>, vector<8x128xf32> -> vector<8x128xf32>
    %cst_22 = arith.constant 9.99999991E-38 : f32
    %42 = vector.broadcast %cst_22 : f32 to vector<8x128xf32>
    %43 = arith.maximumf %41, %42 : vector<8x128xf32>
    %44 = vector.broadcast %37 : vector<8x1xf32> to vector<8x128xf32>
    %45 = arith.addf %16, %44 : vector<8x128xf32>
    %46 = vector.broadcast %5 : vector<1x1xf32> to vector<8x128xf32>
    %47 = arith.addf %45, %46 : vector<8x128xf32>
    %48 = math.log %43 : vector<8x128xf32>
    %49 = arith.addf %47, %48 : vector<8x128xf32>
    %50 = vector.broadcast %3 : vector<1x128xf32> to vector<8x128xf32>
    %51 = arith.addf %50, %16 : vector<8x128xf32>
    %c0_i32_23 = arith.constant 0 : i32
    %52 = arith.cmpi eq, %13, %c0_i32_23 : i32
    %53 = arith.select %52, %51, %49 : vector<8x128xf32>
    %c0_24 = arith.constant 0 : index
    %c0_25 = arith.constant 0 : index
    %54 = vector.load %arg12[%c0_24, %c0_25] : memref<8x128xf32, #tpu.memory_space<vmem>>, vector<8x128xf32>
    tpu.vector_store %arg12[%c0_24, %c0_25], %53 {strides = array<i32>} : memref<8x128xf32, #tpu.memory_space<vmem>>, vector<8x128xf32>,
    %c0_26 = arith.constant 0 : index
    %c0_27 = arith.constant 0 : index
    %55 = vector.load %arg13[%c0_26, %c0_27] : memref<8x128xf32, #tpu.memory_space<vmem>>, vector<8x128xf32>
    %56 = vector.shape_cast %27 : vector<8x1xi1> to vector<8x1xi1>
    %57 = vector.broadcast %56 : vector<8x1xi1> to vector<8x128xi1>
    %58 = arith.select %57, %53, %55 : vector<8x128xi1>, vector<8x128xf32>
    %c0_28 = arith.constant 0 : index
    %c0_29 = arith.constant 0 : index
    %59 = vector.load %arg13[%c0_28, %c0_29] : memref<8x128xf32, #tpu.memory_space<vmem>>, vector<8x128xf32>
    tpu.vector_store %arg13[%c0_28, %c0_29], %58 {strides = array<i32>} : memref<8x128xf32, #tpu.memory_space<vmem>>, vector<8x128xf32>,
    %60 = vector.broadcast %3 : vector<1x128xf32> to vector<8x128xf32>
    %61 = arith.addf %60, %16 : vector<8x128xf32>
    %62 = arith.mulf %23, %61 : vector<8x128xf32>
    %cst_30 = arith.constant dense<0.000000e+00> : vector<8xf32>
    %63 = vector.multi_reduction <add>, %62, %cst_30 [1] : vector<8x128xf32> to vector<8xf32>
    %64 = vector.shape_cast %63 : vector<8xf32> to vector<8x1xf32>
    %c0_31 = arith.constant 0 : index
    %c0_32 = arith.constant 0 : index
    %65 = vector.load %arg14[%c0_31, %c0_32] : memref<8x128xf32, #tpu.memory_space<vmem>>, vector<8x128xf32>
    %cst_33 = arith.constant dense<0.000000e+00> : vector<8x128xf32>
    %66 = tpu.matmul %65, %1, %cst_33 {dimension_numbers = #tpu.dot_dimension_numbers<[1], [0], [0], [1], [0, 0, 1, 1], [], []>} : vector<8x128xf32>, vector<128x128xf32>, vector<8x128xf32> -> vector<8x128xf32>
    %67 = arith.addf %16, %66 : vector<8x128xf32>
    %68 = arith.mulf %23, %67 : vector<8x128xf32>
    %cst_34 = arith.constant dense<0.000000e+00> : vector<8xf32>
    %69 = vector.multi_reduction <add>, %68, %cst_34 [1] : vector<8x128xf32> to vector<8xf32>
    %70 = vector.shape_cast %69 : vector<8xf32> to vector<8x1xf32>
    %71 = vector.broadcast %4 : vector<1x128xf32> to vector<8x128xf32>
    %72 = arith.mulf %23, %71 : vector<8x128xf32>
    %cst_35 = arith.constant dense<0.000000e+00> : vector<8xf32>
    %73 = vector.multi_reduction <add>, %72, %cst_35 [1] : vector<8x128xf32> to vector<8xf32>
    %74 = vector.shape_cast %73 : vector<8xf32> to vector<8x1xf32>
    %c0_i32_36 = arith.constant 0 : i32
    %75 = arith.cmpi eq, %13, %c0_i32_36 : i32
    %cst_37 = arith.constant 0.000000e+00 : f32
    %76 = vector.broadcast %cst_37 : f32 to vector<8x1xf32>
    %77 = arith.select %8, %64, %76 : vector<8x1xi1>, vector<8x1xf32>
    %78 = arith.mulf %34, %70 : vector<8x1xf32>
    %79 = arith.select %75, %77, %78 : vector<8x1xf32>
    %cst_38 = arith.constant 0.000000e+00 : f32
    %80 = vector.broadcast %cst_38 : f32 to vector<8x1xf32>
    %81 = arith.select %27, %74, %80 : vector<8x1xi1>, vector<8x1xf32>
    %82 = arith.addf %79, %81 : vector<8x1xf32>
    %c0_39 = arith.constant 0 : index
    %c0_40 = arith.constant 0 : index
    %83 = vector.load %arg15[%c0_39, %c0_40] : memref<8x1xf32, #tpu.memory_space<vmem>>, vector<8x1xf32>
    %84 = arith.addf %83, %82 : vector<8x1xf32>
    %c0_41 = arith.constant 0 : index
    %c0_42 = arith.constant 0 : index
    %85 = vector.load %arg15[%c0_41, %c0_42] : memref<8x1xf32, #tpu.memory_space<vmem>>, vector<8x1xf32>
    tpu.vector_store %arg15[%c0_41, %c0_42], %84 {strides = array<i32>} : memref<8x1xf32, #tpu.memory_space<vmem>>, vector<8x1xf32>,
    %c0_43 = arith.constant 0 : index
    %c0_44 = arith.constant 0 : index
    %86 = vector.load %arg14[%c0_43, %c0_44] : memref<8x128xf32, #tpu.memory_space<vmem>>, vector<8x128xf32>
    tpu.vector_store %arg14[%c0_43, %c0_44], %23 {strides = array<i32>} : memref<8x128xf32, #tpu.memory_space<vmem>>, vector<8x128xf32>,
    %c1_i32_45 = arith.constant 1 : i32
    %c8_i32_46 = arith.constant 8 : i32
    %87 = arith.muli %arg1, %c8_i32_46 : i32
    %88 = arith.addi %87, %c1_i32_45 : i32
    %89 = arith.index_cast %c1_i32_45 : i32 to index
    %c0_47 = arith.constant 0 : index
    %c0_48 = arith.constant 0 : index
    %90 = vector.load %arg4[%89, %c0_47, %c0_48] : memref<8x8x128xf32, #tpu.memory_space<vmem>>, vector<1x8x128xf32>
    %91 = vector.shape_cast %90 : vector<1x8x128xf32> to vector<8x128xf32>
    %92 = arith.index_cast %c1_i32_45 : i32 to index
    %c0_49 = arith.constant 0 : index
    %c0_50 = arith.constant 0 : index
    %93 = vector.load %arg3[%92, %c0_49, %c0_50] : memref<8x8x1xi32, #tpu.memory_space<vmem>>, vector<1x8x1xi32>
    %94 = vector.shape_cast %93 : vector<1x8x1xi32> to vector<8x1xi32>
    %95 = vector.broadcast %94 : vector<8x1xi32> to vector<8x128xi32>
    %96 = arith.cmpi eq, %6, %95 : vector<8x128xi32>
    %97 = arith.extui %96 : vector<8x128xi1> to vector<8x128xi32>
    %98 = arith.sitofp %97 : vector<8x128xi32> to vector<8x128xf32>
    %c1_i32_51 = arith.constant 1 : i32
    %99 = vector.broadcast %c1_i32_51 : i32 to vector<8x1xi32>
    %100 = arith.subi %0, %99 : vector<8x1xi32>
    %101 = vector.broadcast %88 : i32 to vector<8x1xi32>
    %102 = arith.cmpi eq, %100, %101 : vector<8x1xi32>
    %103 = vector.broadcast %88 : i32 to vector<8x1xi32>
    %104 = arith.cmpi slt, %103, %0 : vector<8x1xi32>
    %c0_i32_52 = arith.constant 0 : i32
    %105 = arith.cmpi sgt, %88, %c0_i32_52 : i32
    %106 = vector.broadcast %105 : i1 to vector<8x1xi1>
    %107 = arith.andi %104, %106 : vector<8x1xi1>
    %108 = arith.extui %107 : vector<8x1xi1> to vector<8x1xi32>
    %109 = arith.sitofp %108 : vector<8x1xi32> to vector<8x1xf32>
    %c0_53 = arith.constant 0 : index
    %c0_54 = arith.constant 0 : index
    %110 = vector.load %arg12[%c0_53, %c0_54] : memref<8x128xf32, #tpu.memory_space<vmem>>, vector<8x128xf32>
    %cst_55 = arith.constant dense<0xFF800000> : vector<8xf32>
    %111 = vector.multi_reduction <maximumf>, %110, %cst_55 [1] : vector<8x128xf32> to vector<8xf32>
    %112 = vector.shape_cast %111 : vector<8xf32> to vector<8x1xf32>
    %113 = vector.broadcast %112 : vector<8x1xf32> to vector<8x128xf32>
    %114 = arith.subf %110, %113 : vector<8x128xf32>
    %115 = math.exp %114 : vector<8x128xf32>
    %cst_56 = arith.constant dense<0.000000e+00> : vector<8x128xf32>
    %116 = tpu.matmul %115, %2, %cst_56 {dimension_numbers = #tpu.dot_dimension_numbers<[1], [0], [0], [1], [0, 0, 1, 1], [], []>} : vector<8x128xf32>, vector<128x128xf32>, vector<8x128xf32> -> vector<8x128xf32>
    %cst_57 = arith.constant 9.99999991E-38 : f32
    %117 = vector.broadcast %cst_57 : f32 to vector<8x128xf32>
    %118 = arith.maximumf %116, %117 : vector<8x128xf32>
    %119 = vector.broadcast %112 : vector<8x1xf32> to vector<8x128xf32>
    %120 = arith.addf %91, %119 : vector<8x128xf32>
    %121 = vector.broadcast %5 : vector<1x1xf32> to vector<8x128xf32>
    %122 = arith.addf %120, %121 : vector<8x128xf32>
    %123 = math.log %118 : vector<8x128xf32>
    %124 = arith.addf %122, %123 : vector<8x128xf32>
    %125 = vector.broadcast %3 : vector<1x128xf32> to vector<8x128xf32>
    %126 = arith.addf %125, %91 : vector<8x128xf32>
    %c0_i32_58 = arith.constant 0 : i32
    %127 = arith.cmpi eq, %88, %c0_i32_58 : i32
    %128 = arith.select %127, %126, %124 : vector<8x128xf32>
    %c0_59 = arith.constant 0 : index
    %c0_60 = arith.constant 0 : index
    %129 = vector.load %arg12[%c0_59, %c0_60] : memref<8x128xf32, #tpu.memory_space<vmem>>, vector<8x128xf32>
    tpu.vector_store %arg12[%c0_59, %c0_60], %128 {strides = array<i32>} : memref<8x128xf32, #tpu.memory_space<vmem>>, vector<8x128xf32>,
    %c0_61 = arith.constant 0 : index
    %c0_62 = arith.constant 0 : index
    %130 = vector.load %arg13[%c0_61, %c0_62] : memref<8x128xf32, #tpu.memory_space<vmem>>, vector<8x128xf32>
    %131 = vector.shape_cast %102 : vector<8x1xi1> to vector<8x1xi1>
    %132 = vector.broadcast %131 : vector<8x1xi1> to vector<8x128xi1>
    %133 = arith.select %132, %128, %130 : vector<8x128xi1>, vector<8x128xf32>
    %c0_63 = arith.constant 0 : index
    %c0_64 = arith.constant 0 : index
    %134 = vector.load %arg13[%c0_63, %c0_64] : memref<8x128xf32, #tpu.memory_space<vmem>>, vector<8x128xf32>
    tpu.vector_store %arg13[%c0_63, %c0_64], %133 {strides = array<i32>} : memref<8x128xf32, #tpu.memory_space<vmem>>, vector<8x128xf32>,
    %135 = vector.broadcast %3 : vector<1x128xf32> to vector<8x128xf32>
    %136 = arith.addf %135, %91 : vector<8x128xf32>
    %137 = arith.mulf %98, %136 : vector<8x128xf32>
    %cst_65 = arith.constant dense<0.000000e+00> : vector<8xf32>
    %138 = vector.multi_reduction <add>, %137, %cst_65 [1] : vector<8x128xf32> to vector<8xf32>
    %139 = vector.shape_cast %138 : vector<8xf32> to vector<8x1xf32>
    %c0_66 = arith.constant 0 : index
    %c0_67 = arith.constant 0 : index
    %140 = vector.load %arg14[%c0_66, %c0_67] : memref<8x128xf32, #tpu.memory_space<vmem>>, vector<8x128xf32>
    %cst_68 = arith.constant dense<0.000000e+00> : vector<8x128xf32>
    %141 = tpu.matmul %140, %1, %cst_68 {dimension_numbers = #tpu.dot_dimension_numbers<[1], [0], [0], [1], [0, 0, 1, 1], [], []>} : vector<8x128xf32>, vector<128x128xf32>, vector<8x128xf32> -> vector<8x128xf32>
    %142 = arith.addf %91, %141 : vector<8x128xf32>
    %143 = arith.mulf %98, %142 : vector<8x128xf32>
    %cst_69 = arith.constant dense<0.000000e+00> : vector<8xf32>
    %144 = vector.multi_reduction <add>, %143, %cst_69 [1] : vector<8x128xf32> to vector<8xf32>
    %145 = vector.shape_cast %144 : vector<8xf32> to vector<8x1xf32>
    %146 = vector.broadcast %4 : vector<1x128xf32> to vector<8x128xf32>
    %147 = arith.mulf %98, %146 : vector<8x128xf32>
    %cst_70 = arith.constant dense<0.000000e+00> : vector<8xf32>
    %148 = vector.multi_reduction <add>, %147, %cst_70 [1] : vector<8x128xf32> to vector<8xf32>
    %149 = vector.shape_cast %148 : vector<8xf32> to vector<8x1xf32>
    %c0_i32_71 = arith.constant 0 : i32
    %150 = arith.cmpi eq, %88, %c0_i32_71 : i32
    %cst_72 = arith.constant 0.000000e+00 : f32
    %151 = vector.broadcast %cst_72 : f32 to vector<8x1xf32>
    %152 = arith.select %8, %139, %151 : vector<8x1xi1>, vector<8x1xf32>
    %153 = arith.mulf %109, %145 : vector<8x1xf32>
    %154 = arith.select %150, %152, %153 : vector<8x1xf32>
    %cst_73 = arith.constant 0.000000e+00 : f32
    %155 = vector.broadcast %cst_73 : f32 to vector<8x1xf32>
    %156 = arith.select %102, %149, %155 : vector<8x1xi1>, vector<8x1xf32>
    %157 = arith.addf %154, %156 : vector<8x1xf32>
    %c0_74 = arith.constant 0 : index
    %c0_75 = arith.constant 0 : index
    %158 = vector.load %arg15[%c0_74, %c0_75] : memref<8x1xf32, #tpu.memory_space<vmem>>, vector<8x1xf32>
    %159 = arith.addf %158, %157 : vector<8x1xf32>
    %c0_76 = arith.constant 0 : index
    %c0_77 = arith.constant 0 : index
    %160 = vector.load %arg15[%c0_76, %c0_77] : memref<8x1xf32, #tpu.memory_space<vmem>>, vector<8x1xf32>
    tpu.vector_store %arg15[%c0_76, %c0_77], %159 {strides = array<i32>} : memref<8x1xf32, #tpu.memory_space<vmem>>, vector<8x1xf32>,
    %c0_78 = arith.constant 0 : index
    %c0_79 = arith.constant 0 : index
    %161 = vector.load %arg14[%c0_78, %c0_79] : memref<8x128xf32, #tpu.memory_space<vmem>>, vector<8x128xf32>
    tpu.vector_store %arg14[%c0_78, %c0_79], %98 {strides = array<i32>} : memref<8x128xf32, #tpu.memory_space<vmem>>, vector<8x128xf32>,
    %c2_i32 = arith.constant 2 : i32
    %c8_i32_80 = arith.constant 8 : i32
    %162 = arith.muli %arg1, %c8_i32_80 : i32
    %163 = arith.addi %162, %c2_i32 : i32
    %164 = arith.index_cast %c2_i32 : i32 to index
    %c0_81 = arith.constant 0 : index
    %c0_82 = arith.constant 0 : index
    %165 = vector.load %arg4[%164, %c0_81, %c0_82] : memref<8x8x128xf32, #tpu.memory_space<vmem>>, vector<1x8x128xf32>
    %166 = vector.shape_cast %165 : vector<1x8x128xf32> to vector<8x128xf32>
    %167 = arith.index_cast %c2_i32 : i32 to index
    %c0_83 = arith.constant 0 : index
    %c0_84 = arith.constant 0 : index
    %168 = vector.load %arg3[%167, %c0_83, %c0_84] : memref<8x8x1xi32, #tpu.memory_space<vmem>>, vector<1x8x1xi32>
    %169 = vector.shape_cast %168 : vector<1x8x1xi32> to vector<8x1xi32>
    %170 = vector.broadcast %169 : vector<8x1xi32> to vector<8x128xi32>
    %171 = arith.cmpi eq, %6, %170 : vector<8x128xi32>
    %172 = arith.extui %171 : vector<8x128xi1> to vector<8x128xi32>
    %173 = arith.sitofp %172 : vector<8x128xi32> to vector<8x128xf32>
    %c1_i32_85 = arith.constant 1 : i32
    %174 = vector.broadcast %c1_i32_85 : i32 to vector<8x1xi32>
    %175 = arith.subi %0, %174 : vector<8x1xi32>
    %176 = vector.broadcast %163 : i32 to vector<8x1xi32>
    %177 = arith.cmpi eq, %175, %176 : vector<8x1xi32>
    %178 = vector.broadcast %163 : i32 to vector<8x1xi32>
    %179 = arith.cmpi slt, %178, %0 : vector<8x1xi32>
    %c0_i32_86 = arith.constant 0 : i32
    %180 = arith.cmpi sgt, %163, %c0_i32_86 : i32
    %181 = vector.broadcast %180 : i1 to vector<8x1xi1>
    %182 = arith.andi %179, %181 : vector<8x1xi1>
    %183 = arith.extui %182 : vector<8x1xi1> to vector<8x1xi32>
    %184 = arith.sitofp %183 : vector<8x1xi32> to vector<8x1xf32>
    %c0_87 = arith.constant 0 : index
    %c0_88 = arith.constant 0 : index
    %185 = vector.load %arg12[%c0_87, %c0_88] : memref<8x128xf32, #tpu.memory_space<vmem>>, vector<8x128xf32>
    %cst_89 = arith.constant dense<0xFF800000> : vector<8xf32>
    %186 = vector.multi_reduction <maximumf>, %185, %cst_89 [1] : vector<8x128xf32> to vector<8xf32>
    %187 = vector.shape_cast %186 : vector<8xf32> to vector<8x1xf32>
    %188 = vector.broadcast %187 : vector<8x1xf32> to vector<8x128xf32>
    %189 = arith.subf %185, %188 : vector<8x128xf32>
    %190 = math.exp %189 : vector<8x128xf32>
    %cst_90 = arith.constant dense<0.000000e+00> : vector<8x128xf32>
    %191 = tpu.matmul %190, %2, %cst_90 {dimension_numbers = #tpu.dot_dimension_numbers<[1], [0], [0], [1], [0, 0, 1, 1], [], []>} : vector<8x128xf32>, vector<128x128xf32>, vector<8x128xf32> -> vector<8x128xf32>
    %cst_91 = arith.constant 9.99999991E-38 : f32
    %192 = vector.broadcast %cst_91 : f32 to vector<8x128xf32>
    %193 = arith.maximumf %191, %192 : vector<8x128xf32>
    %194 = vector.broadcast %187 : vector<8x1xf32> to vector<8x128xf32>
    %195 = arith.addf %166, %194 : vector<8x128xf32>
    %196 = vector.broadcast %5 : vector<1x1xf32> to vector<8x128xf32>
    %197 = arith.addf %195, %196 : vector<8x128xf32>
    %198 = math.log %193 : vector<8x128xf32>
    %199 = arith.addf %197, %198 : vector<8x128xf32>
    %200 = vector.broadcast %3 : vector<1x128xf32> to vector<8x128xf32>
    %201 = arith.addf %200, %166 : vector<8x128xf32>
    %c0_i32_92 = arith.constant 0 : i32
    %202 = arith.cmpi eq, %163, %c0_i32_92 : i32
    %203 = arith.select %202, %201, %199 : vector<8x128xf32>
    %c0_93 = arith.constant 0 : index
    %c0_94 = arith.constant 0 : index
    %204 = vector.load %arg12[%c0_93, %c0_94] : memref<8x128xf32, #tpu.memory_space<vmem>>, vector<8x128xf32>
    tpu.vector_store %arg12[%c0_93, %c0_94], %203 {strides = array<i32>} : memref<8x128xf32, #tpu.memory_space<vmem>>, vector<8x128xf32>,
    %c0_95 = arith.constant 0 : index
    %c0_96 = arith.constant 0 : index
    %205 = vector.load %arg13[%c0_95, %c0_96] : memref<8x128xf32, #tpu.memory_space<vmem>>, vector<8x128xf32>
    %206 = vector.shape_cast %177 : vector<8x1xi1> to vector<8x1xi1>
    %207 = vector.broadcast %206 : vector<8x1xi1> to vector<8x128xi1>
    %208 = arith.select %207, %203, %205 : vector<8x128xi1>, vector<8x128xf32>
    %c0_97 = arith.constant 0 : index
    %c0_98 = arith.constant 0 : index
    %209 = vector.load %arg13[%c0_97, %c0_98] : memref<8x128xf32, #tpu.memory_space<vmem>>, vector<8x128xf32>
    tpu.vector_store %arg13[%c0_97, %c0_98], %208 {strides = array<i32>} : memref<8x128xf32, #tpu.memory_space<vmem>>, vector<8x128xf32>,
    %210 = vector.broadcast %3 : vector<1x128xf32> to vector<8x128xf32>
    %211 = arith.addf %210, %166 : vector<8x128xf32>
    %212 = arith.mulf %173, %211 : vector<8x128xf32>
    %cst_99 = arith.constant dense<0.000000e+00> : vector<8xf32>
    %213 = vector.multi_reduction <add>, %212, %cst_99 [1] : vector<8x128xf32> to vector<8xf32>
    %214 = vector.shape_cast %213 : vector<8xf32> to vector<8x1xf32>
    %c0_100 = arith.constant 0 : index
    %c0_101 = arith.constant 0 : index
    %215 = vector.load %arg14[%c0_100, %c0_101] : memref<8x128xf32, #tpu.memory_space<vmem>>, vector<8x128xf32>
    %cst_102 = arith.constant dense<0.000000e+00> : vector<8x128xf32>
    %216 = tpu.matmul %215, %1, %cst_102 {dimension_numbers = #tpu.dot_dimension_numbers<[1], [0], [0], [1], [0, 0, 1, 1], [], []>} : vector<8x128xf32>, vector<128x128xf32>, vector<8x128xf32> -> vector<8x128xf32>
    %217 = arith.addf %166, %216 : vector<8x128xf32>
    %218 = arith.mulf %173, %217 : vector<8x128xf32>
    %cst_103 = arith.constant dense<0.000000e+00> : vector<8xf32>
    %219 = vector.multi_reduction <add>, %218, %cst_103 [1] : vector<8x128xf32> to vector<8xf32>
    %220 = vector.shape_cast %219 : vector<8xf32> to vector<8x1xf32>
    %221 = vector.broadcast %4 : vector<1x128xf32> to vector<8x128xf32>
    %222 = arith.mulf %173, %221 : vector<8x128xf32>
    %cst_104 = arith.constant dense<0.000000e+00> : vector<8xf32>
    %223 = vector.multi_reduction <add>, %222, %cst_104 [1] : vector<8x128xf32> to vector<8xf32>
    %224 = vector.shape_cast %223 : vector<8xf32> to vector<8x1xf32>
    %c0_i32_105 = arith.constant 0 : i32
    %225 = arith.cmpi eq, %163, %c0_i32_105 : i32
    %cst_106 = arith.constant 0.000000e+00 : f32
    %226 = vector.broadcast %cst_106 : f32 to vector<8x1xf32>
    %227 = arith.select %8, %214, %226 : vector<8x1xi1>, vector<8x1xf32>
    %228 = arith.mulf %184, %220 : vector<8x1xf32>
    %229 = arith.select %225, %227, %228 : vector<8x1xf32>
    %cst_107 = arith.constant 0.000000e+00 : f32
    %230 = vector.broadcast %cst_107 : f32 to vector<8x1xf32>
    %231 = arith.select %177, %224, %230 : vector<8x1xi1>, vector<8x1xf32>
    %232 = arith.addf %229, %231 : vector<8x1xf32>
    %c0_108 = arith.constant 0 : index
    %c0_109 = arith.constant 0 : index
    %233 = vector.load %arg15[%c0_108, %c0_109] : memref<8x1xf32, #tpu.memory_space<vmem>>, vector<8x1xf32>
    %234 = arith.addf %233, %232 : vector<8x1xf32>
    %c0_110 = arith.constant 0 : index
    %c0_111 = arith.constant 0 : index
    %235 = vector.load %arg15[%c0_110, %c0_111] : memref<8x1xf32, #tpu.memory_space<vmem>>, vector<8x1xf32>
    tpu.vector_store %arg15[%c0_110, %c0_111], %234 {strides = array<i32>} : memref<8x1xf32, #tpu.memory_space<vmem>>, vector<8x1xf32>,
    %c0_112 = arith.constant 0 : index
    %c0_113 = arith.constant 0 : index
    %236 = vector.load %arg14[%c0_112, %c0_113] : memref<8x128xf32, #tpu.memory_space<vmem>>, vector<8x128xf32>
    tpu.vector_store %arg14[%c0_112, %c0_113], %173 {strides = array<i32>} : memref<8x128xf32, #tpu.memory_space<vmem>>, vector<8x128xf32>,
    %c3_i32 = arith.constant 3 : i32
    %c8_i32_114 = arith.constant 8 : i32
    %237 = arith.muli %arg1, %c8_i32_114 : i32
    %238 = arith.addi %237, %c3_i32 : i32
    %239 = arith.index_cast %c3_i32 : i32 to index
    %c0_115 = arith.constant 0 : index
    %c0_116 = arith.constant 0 : index
    %240 = vector.load %arg4[%239, %c0_115, %c0_116] : memref<8x8x128xf32, #tpu.memory_space<vmem>>, vector<1x8x128xf32>
    %241 = vector.shape_cast %240 : vector<1x8x128xf32> to vector<8x128xf32>
    %242 = arith.index_cast %c3_i32 : i32 to index
    %c0_117 = arith.constant 0 : index
    %c0_118 = arith.constant 0 : index
    %243 = vector.load %arg3[%242, %c0_117, %c0_118] : memref<8x8x1xi32, #tpu.memory_space<vmem>>, vector<1x8x1xi32>
    %244 = vector.shape_cast %243 : vector<1x8x1xi32> to vector<8x1xi32>
    %245 = vector.broadcast %244 : vector<8x1xi32> to vector<8x128xi32>
    %246 = arith.cmpi eq, %6, %245 : vector<8x128xi32>
    %247 = arith.extui %246 : vector<8x128xi1> to vector<8x128xi32>
    %248 = arith.sitofp %247 : vector<8x128xi32> to vector<8x128xf32>
    %c1_i32_119 = arith.constant 1 : i32
    %249 = vector.broadcast %c1_i32_119 : i32 to vector<8x1xi32>
    %250 = arith.subi %0, %249 : vector<8x1xi32>
    %251 = vector.broadcast %238 : i32 to vector<8x1xi32>
    %252 = arith.cmpi eq, %250, %251 : vector<8x1xi32>
    %253 = vector.broadcast %238 : i32 to vector<8x1xi32>
    %254 = arith.cmpi slt, %253, %0 : vector<8x1xi32>
    %c0_i32_120 = arith.constant 0 : i32
    %255 = arith.cmpi sgt, %238, %c0_i32_120 : i32
    %256 = vector.broadcast %255 : i1 to vector<8x1xi1>
    %257 = arith.andi %254, %256 : vector<8x1xi1>
    %258 = arith.extui %257 : vector<8x1xi1> to vector<8x1xi32>
    %259 = arith.sitofp %258 : vector<8x1xi32> to vector<8x1xf32>
    %c0_121 = arith.constant 0 : index
    %c0_122 = arith.constant 0 : index
    %260 = vector.load %arg12[%c0_121, %c0_122] : memref<8x128xf32, #tpu.memory_space<vmem>>, vector<8x128xf32>
    %cst_123 = arith.constant dense<0xFF800000> : vector<8xf32>
    %261 = vector.multi_reduction <maximumf>, %260, %cst_123 [1] : vector<8x128xf32> to vector<8xf32>
    %262 = vector.shape_cast %261 : vector<8xf32> to vector<8x1xf32>
    %263 = vector.broadcast %262 : vector<8x1xf32> to vector<8x128xf32>
    %264 = arith.subf %260, %263 : vector<8x128xf32>
    %265 = math.exp %264 : vector<8x128xf32>
    %cst_124 = arith.constant dense<0.000000e+00> : vector<8x128xf32>
    %266 = tpu.matmul %265, %2, %cst_124 {dimension_numbers = #tpu.dot_dimension_numbers<[1], [0], [0], [1], [0, 0, 1, 1], [], []>} : vector<8x128xf32>, vector<128x128xf32>, vector<8x128xf32> -> vector<8x128xf32>
    %cst_125 = arith.constant 9.99999991E-38 : f32
    %267 = vector.broadcast %cst_125 : f32 to vector<8x128xf32>
    %268 = arith.maximumf %266, %267 : vector<8x128xf32>
    %269 = vector.broadcast %262 : vector<8x1xf32> to vector<8x128xf32>
    %270 = arith.addf %241, %269 : vector<8x128xf32>
    %271 = vector.broadcast %5 : vector<1x1xf32> to vector<8x128xf32>
    %272 = arith.addf %270, %271 : vector<8x128xf32>
    %273 = math.log %268 : vector<8x128xf32>
    %274 = arith.addf %272, %273 : vector<8x128xf32>
    %275 = vector.broadcast %3 : vector<1x128xf32> to vector<8x128xf32>
    %276 = arith.addf %275, %241 : vector<8x128xf32>
    %c0_i32_126 = arith.constant 0 : i32
    %277 = arith.cmpi eq, %238, %c0_i32_126 : i32
    %278 = arith.select %277, %276, %274 : vector<8x128xf32>
    %c0_127 = arith.constant 0 : index
    %c0_128 = arith.constant 0 : index
    %279 = vector.load %arg12[%c0_127, %c0_128] : memref<8x128xf32, #tpu.memory_space<vmem>>, vector<8x128xf32>
    tpu.vector_store %arg12[%c0_127, %c0_128], %278 {strides = array<i32>} : memref<8x128xf32, #tpu.memory_space<vmem>>, vector<8x128xf32>,
    %c0_129 = arith.constant 0 : index
    %c0_130 = arith.constant 0 : index
    %280 = vector.load %arg13[%c0_129, %c0_130] : memref<8x128xf32, #tpu.memory_space<vmem>>, vector<8x128xf32>
    %281 = vector.shape_cast %252 : vector<8x1xi1> to vector<8x1xi1>
    %282 = vector.broadcast %281 : vector<8x1xi1> to vector<8x128xi1>
    %283 = arith.select %282, %278, %280 : vector<8x128xi1>, vector<8x128xf32>
    %c0_131 = arith.constant 0 : index
    %c0_132 = arith.constant 0 : index
    %284 = vector.load %arg13[%c0_131, %c0_132] : memref<8x128xf32, #tpu.memory_space<vmem>>, vector<8x128xf32>
    tpu.vector_store %arg13[%c0_131, %c0_132], %283 {strides = array<i32>} : memref<8x128xf32, #tpu.memory_space<vmem>>, vector<8x128xf32>,
    %285 = vector.broadcast %3 : vector<1x128xf32> to vector<8x128xf32>
    %286 = arith.addf %285, %241 : vector<8x128xf32>
    %287 = arith.mulf %248, %286 : vector<8x128xf32>
    %cst_133 = arith.constant dense<0.000000e+00> : vector<8xf32>
    %288 = vector.multi_reduction <add>, %287, %cst_133 [1] : vector<8x128xf32> to vector<8xf32>
    %289 = vector.shape_cast %288 : vector<8xf32> to vector<8x1xf32>
    %c0_134 = arith.constant 0 : index
    %c0_135 = arith.constant 0 : index
    %290 = vector.load %arg14[%c0_134, %c0_135] : memref<8x128xf32, #tpu.memory_space<vmem>>, vector<8x128xf32>
    %cst_136 = arith.constant dense<0.000000e+00> : vector<8x128xf32>
    %291 = tpu.matmul %290, %1, %cst_136 {dimension_numbers = #tpu.dot_dimension_numbers<[1], [0], [0], [1], [0, 0, 1, 1], [], []>} : vector<8x128xf32>, vector<128x128xf32>, vector<8x128xf32> -> vector<8x128xf32>
    %292 = arith.addf %241, %291 : vector<8x128xf32>
    %293 = arith.mulf %248, %292 : vector<8x128xf32>
    %cst_137 = arith.constant dense<0.000000e+00> : vector<8xf32>
    %294 = vector.multi_reduction <add>, %293, %cst_137 [1] : vector<8x128xf32> to vector<8xf32>
    %295 = vector.shape_cast %294 : vector<8xf32> to vector<8x1xf32>
    %296 = vector.broadcast %4 : vector<1x128xf32> to vector<8x128xf32>
    %297 = arith.mulf %248, %296 : vector<8x128xf32>
    %cst_138 = arith.constant dense<0.000000e+00> : vector<8xf32>
    %298 = vector.multi_reduction <add>, %297, %cst_138 [1] : vector<8x128xf32> to vector<8xf32>
    %299 = vector.shape_cast %298 : vector<8xf32> to vector<8x1xf32>
    %c0_i32_139 = arith.constant 0 : i32
    %300 = arith.cmpi eq, %238, %c0_i32_139 : i32
    %cst_140 = arith.constant 0.000000e+00 : f32
    %301 = vector.broadcast %cst_140 : f32 to vector<8x1xf32>
    %302 = arith.select %8, %289, %301 : vector<8x1xi1>, vector<8x1xf32>
    %303 = arith.mulf %259, %295 : vector<8x1xf32>
    %304 = arith.select %300, %302, %303 : vector<8x1xf32>
    %cst_141 = arith.constant 0.000000e+00 : f32
    %305 = vector.broadcast %cst_141 : f32 to vector<8x1xf32>
    %306 = arith.select %252, %299, %305 : vector<8x1xi1>, vector<8x1xf32>
    %307 = arith.addf %304, %306 : vector<8x1xf32>
    %c0_142 = arith.constant 0 : index
    %c0_143 = arith.constant 0 : index
    %308 = vector.load %arg15[%c0_142, %c0_143] : memref<8x1xf32, #tpu.memory_space<vmem>>, vector<8x1xf32>
    %309 = arith.addf %308, %307 : vector<8x1xf32>
    %c0_144 = arith.constant 0 : index
    %c0_145 = arith.constant 0 : index
    %310 = vector.load %arg15[%c0_144, %c0_145] : memref<8x1xf32, #tpu.memory_space<vmem>>, vector<8x1xf32>
    tpu.vector_store %arg15[%c0_144, %c0_145], %309 {strides = array<i32>} : memref<8x1xf32, #tpu.memory_space<vmem>>, vector<8x1xf32>,
    %c0_146 = arith.constant 0 : index
    %c0_147 = arith.constant 0 : index
    %311 = vector.load %arg14[%c0_146, %c0_147] : memref<8x128xf32, #tpu.memory_space<vmem>>, vector<8x128xf32>
    tpu.vector_store %arg14[%c0_146, %c0_147], %248 {strides = array<i32>} : memref<8x128xf32, #tpu.memory_space<vmem>>, vector<8x128xf32>,
    %c4_i32 = arith.constant 4 : i32
    %c8_i32_148 = arith.constant 8 : i32
    %312 = arith.muli %arg1, %c8_i32_148 : i32
    %313 = arith.addi %312, %c4_i32 : i32
    %314 = arith.index_cast %c4_i32 : i32 to index
    %c0_149 = arith.constant 0 : index
    %c0_150 = arith.constant 0 : index
    %315 = vector.load %arg4[%314, %c0_149, %c0_150] : memref<8x8x128xf32, #tpu.memory_space<vmem>>, vector<1x8x128xf32>
    %316 = vector.shape_cast %315 : vector<1x8x128xf32> to vector<8x128xf32>
    %317 = arith.index_cast %c4_i32 : i32 to index
    %c0_151 = arith.constant 0 : index
    %c0_152 = arith.constant 0 : index
    %318 = vector.load %arg3[%317, %c0_151, %c0_152] : memref<8x8x1xi32, #tpu.memory_space<vmem>>, vector<1x8x1xi32>
    %319 = vector.shape_cast %318 : vector<1x8x1xi32> to vector<8x1xi32>
    %320 = vector.broadcast %319 : vector<8x1xi32> to vector<8x128xi32>
    %321 = arith.cmpi eq, %6, %320 : vector<8x128xi32>
    %322 = arith.extui %321 : vector<8x128xi1> to vector<8x128xi32>
    %323 = arith.sitofp %322 : vector<8x128xi32> to vector<8x128xf32>
    %c1_i32_153 = arith.constant 1 : i32
    %324 = vector.broadcast %c1_i32_153 : i32 to vector<8x1xi32>
    %325 = arith.subi %0, %324 : vector<8x1xi32>
    %326 = vector.broadcast %313 : i32 to vector<8x1xi32>
    %327 = arith.cmpi eq, %325, %326 : vector<8x1xi32>
    %328 = vector.broadcast %313 : i32 to vector<8x1xi32>
    %329 = arith.cmpi slt, %328, %0 : vector<8x1xi32>
    %c0_i32_154 = arith.constant 0 : i32
    %330 = arith.cmpi sgt, %313, %c0_i32_154 : i32
    %331 = vector.broadcast %330 : i1 to vector<8x1xi1>
    %332 = arith.andi %329, %331 : vector<8x1xi1>
    %333 = arith.extui %332 : vector<8x1xi1> to vector<8x1xi32>
    %334 = arith.sitofp %333 : vector<8x1xi32> to vector<8x1xf32>
    %c0_155 = arith.constant 0 : index
    %c0_156 = arith.constant 0 : index
    %335 = vector.load %arg12[%c0_155, %c0_156] : memref<8x128xf32, #tpu.memory_space<vmem>>, vector<8x128xf32>
    %cst_157 = arith.constant dense<0xFF800000> : vector<8xf32>
    %336 = vector.multi_reduction <maximumf>, %335, %cst_157 [1] : vector<8x128xf32> to vector<8xf32>
    %337 = vector.shape_cast %336 : vector<8xf32> to vector<8x1xf32>
    %338 = vector.broadcast %337 : vector<8x1xf32> to vector<8x128xf32>
    %339 = arith.subf %335, %338 : vector<8x128xf32>
    %340 = math.exp %339 : vector<8x128xf32>
    %cst_158 = arith.constant dense<0.000000e+00> : vector<8x128xf32>
    %341 = tpu.matmul %340, %2, %cst_158 {dimension_numbers = #tpu.dot_dimension_numbers<[1], [0], [0], [1], [0, 0, 1, 1], [], []>} : vector<8x128xf32>, vector<128x128xf32>, vector<8x128xf32> -> vector<8x128xf32>
    %cst_159 = arith.constant 9.99999991E-38 : f32
    %342 = vector.broadcast %cst_159 : f32 to vector<8x128xf32>
    %343 = arith.maximumf %341, %342 : vector<8x128xf32>
    %344 = vector.broadcast %337 : vector<8x1xf32> to vector<8x128xf32>
    %345 = arith.addf %316, %344 : vector<8x128xf32>
    %346 = vector.broadcast %5 : vector<1x1xf32> to vector<8x128xf32>
    %347 = arith.addf %345, %346 : vector<8x128xf32>
    %348 = math.log %343 : vector<8x128xf32>
    %349 = arith.addf %347, %348 : vector<8x128xf32>
    %350 = vector.broadcast %3 : vector<1x128xf32> to vector<8x128xf32>
    %351 = arith.addf %350, %316 : vector<8x128xf32>
    %c0_i32_160 = arith.constant 0 : i32
    %352 = arith.cmpi eq, %313, %c0_i32_160 : i32
    %353 = arith.select %352, %351, %349 : vector<8x128xf32>
    %c0_161 = arith.constant 0 : index
    %c0_162 = arith.constant 0 : index
    %354 = vector.load %arg12[%c0_161, %c0_162] : memref<8x128xf32, #tpu.memory_space<vmem>>, vector<8x128xf32>
    tpu.vector_store %arg12[%c0_161, %c0_162], %353 {strides = array<i32>} : memref<8x128xf32, #tpu.memory_space<vmem>>, vector<8x128xf32>,
    %c0_163 = arith.constant 0 : index
    %c0_164 = arith.constant 0 : index
    %355 = vector.load %arg13[%c0_163, %c0_164] : memref<8x128xf32, #tpu.memory_space<vmem>>, vector<8x128xf32>
    %356 = vector.shape_cast %327 : vector<8x1xi1> to vector<8x1xi1>
    %357 = vector.broadcast %356 : vector<8x1xi1> to vector<8x128xi1>
    %358 = arith.select %357, %353, %355 : vector<8x128xi1>, vector<8x128xf32>
    %c0_165 = arith.constant 0 : index
    %c0_166 = arith.constant 0 : index
    %359 = vector.load %arg13[%c0_165, %c0_166] : memref<8x128xf32, #tpu.memory_space<vmem>>, vector<8x128xf32>
    tpu.vector_store %arg13[%c0_165, %c0_166], %358 {strides = array<i32>} : memref<8x128xf32, #tpu.memory_space<vmem>>, vector<8x128xf32>,
    %360 = vector.broadcast %3 : vector<1x128xf32> to vector<8x128xf32>
    %361 = arith.addf %360, %316 : vector<8x128xf32>
    %362 = arith.mulf %323, %361 : vector<8x128xf32>
    %cst_167 = arith.constant dense<0.000000e+00> : vector<8xf32>
    %363 = vector.multi_reduction <add>, %362, %cst_167 [1] : vector<8x128xf32> to vector<8xf32>
    %364 = vector.shape_cast %363 : vector<8xf32> to vector<8x1xf32>
    %c0_168 = arith.constant 0 : index
    %c0_169 = arith.constant 0 : index
    %365 = vector.load %arg14[%c0_168, %c0_169] : memref<8x128xf32, #tpu.memory_space<vmem>>, vector<8x128xf32>
    %cst_170 = arith.constant dense<0.000000e+00> : vector<8x128xf32>
    %366 = tpu.matmul %365, %1, %cst_170 {dimension_numbers = #tpu.dot_dimension_numbers<[1], [0], [0], [1], [0, 0, 1, 1], [], []>} : vector<8x128xf32>, vector<128x128xf32>, vector<8x128xf32> -> vector<8x128xf32>
    %367 = arith.addf %316, %366 : vector<8x128xf32>
    %368 = arith.mulf %323, %367 : vector<8x128xf32>
    %cst_171 = arith.constant dense<0.000000e+00> : vector<8xf32>
    %369 = vector.multi_reduction <add>, %368, %cst_171 [1] : vector<8x128xf32> to vector<8xf32>
    %370 = vector.shape_cast %369 : vector<8xf32> to vector<8x1xf32>
    %371 = vector.broadcast %4 : vector<1x128xf32> to vector<8x128xf32>
    %372 = arith.mulf %323, %371 : vector<8x128xf32>
    %cst_172 = arith.constant dense<0.000000e+00> : vector<8xf32>
    %373 = vector.multi_reduction <add>, %372, %cst_172 [1] : vector<8x128xf32> to vector<8xf32>
    %374 = vector.shape_cast %373 : vector<8xf32> to vector<8x1xf32>
    %c0_i32_173 = arith.constant 0 : i32
    %375 = arith.cmpi eq, %313, %c0_i32_173 : i32
    %cst_174 = arith.constant 0.000000e+00 : f32
    %376 = vector.broadcast %cst_174 : f32 to vector<8x1xf32>
    %377 = arith.select %8, %364, %376 : vector<8x1xi1>, vector<8x1xf32>
    %378 = arith.mulf %334, %370 : vector<8x1xf32>
    %379 = arith.select %375, %377, %378 : vector<8x1xf32>
    %cst_175 = arith.constant 0.000000e+00 : f32
    %380 = vector.broadcast %cst_175 : f32 to vector<8x1xf32>
    %381 = arith.select %327, %374, %380 : vector<8x1xi1>, vector<8x1xf32>
    %382 = arith.addf %379, %381 : vector<8x1xf32>
    %c0_176 = arith.constant 0 : index
    %c0_177 = arith.constant 0 : index
    %383 = vector.load %arg15[%c0_176, %c0_177] : memref<8x1xf32, #tpu.memory_space<vmem>>, vector<8x1xf32>
    %384 = arith.addf %383, %382 : vector<8x1xf32>
    %c0_178 = arith.constant 0 : index
    %c0_179 = arith.constant 0 : index
    %385 = vector.load %arg15[%c0_178, %c0_179] : memref<8x1xf32, #tpu.memory_space<vmem>>, vector<8x1xf32>
    tpu.vector_store %arg15[%c0_178, %c0_179], %384 {strides = array<i32>} : memref<8x1xf32, #tpu.memory_space<vmem>>, vector<8x1xf32>,
    %c0_180 = arith.constant 0 : index
    %c0_181 = arith.constant 0 : index
    %386 = vector.load %arg14[%c0_180, %c0_181] : memref<8x128xf32, #tpu.memory_space<vmem>>, vector<8x128xf32>
    tpu.vector_store %arg14[%c0_180, %c0_181], %323 {strides = array<i32>} : memref<8x128xf32, #tpu.memory_space<vmem>>, vector<8x128xf32>,
    %c5_i32 = arith.constant 5 : i32
    %c8_i32_182 = arith.constant 8 : i32
    %387 = arith.muli %arg1, %c8_i32_182 : i32
    %388 = arith.addi %387, %c5_i32 : i32
    %389 = arith.index_cast %c5_i32 : i32 to index
    %c0_183 = arith.constant 0 : index
    %c0_184 = arith.constant 0 : index
    %390 = vector.load %arg4[%389, %c0_183, %c0_184] : memref<8x8x128xf32, #tpu.memory_space<vmem>>, vector<1x8x128xf32>
    %391 = vector.shape_cast %390 : vector<1x8x128xf32> to vector<8x128xf32>
    %392 = arith.index_cast %c5_i32 : i32 to index
    %c0_185 = arith.constant 0 : index
    %c0_186 = arith.constant 0 : index
    %393 = vector.load %arg3[%392, %c0_185, %c0_186] : memref<8x8x1xi32, #tpu.memory_space<vmem>>, vector<1x8x1xi32>
    %394 = vector.shape_cast %393 : vector<1x8x1xi32> to vector<8x1xi32>
    %395 = vector.broadcast %394 : vector<8x1xi32> to vector<8x128xi32>
    %396 = arith.cmpi eq, %6, %395 : vector<8x128xi32>
    %397 = arith.extui %396 : vector<8x128xi1> to vector<8x128xi32>
    %398 = arith.sitofp %397 : vector<8x128xi32> to vector<8x128xf32>
    %c1_i32_187 = arith.constant 1 : i32
    %399 = vector.broadcast %c1_i32_187 : i32 to vector<8x1xi32>
    %400 = arith.subi %0, %399 : vector<8x1xi32>
    %401 = vector.broadcast %388 : i32 to vector<8x1xi32>
    %402 = arith.cmpi eq, %400, %401 : vector<8x1xi32>
    %403 = vector.broadcast %388 : i32 to vector<8x1xi32>
    %404 = arith.cmpi slt, %403, %0 : vector<8x1xi32>
    %c0_i32_188 = arith.constant 0 : i32
    %405 = arith.cmpi sgt, %388, %c0_i32_188 : i32
    %406 = vector.broadcast %405 : i1 to vector<8x1xi1>
    %407 = arith.andi %404, %406 : vector<8x1xi1>
    %408 = arith.extui %407 : vector<8x1xi1> to vector<8x1xi32>
    %409 = arith.sitofp %408 : vector<8x1xi32> to vector<8x1xf32>
    %c0_189 = arith.constant 0 : index
    %c0_190 = arith.constant 0 : index
    %410 = vector.load %arg12[%c0_189, %c0_190] : memref<8x128xf32, #tpu.memory_space<vmem>>, vector<8x128xf32>
    %cst_191 = arith.constant dense<0xFF800000> : vector<8xf32>
    %411 = vector.multi_reduction <maximumf>, %410, %cst_191 [1] : vector<8x128xf32> to vector<8xf32>
    %412 = vector.shape_cast %411 : vector<8xf32> to vector<8x1xf32>
    %413 = vector.broadcast %412 : vector<8x1xf32> to vector<8x128xf32>
    %414 = arith.subf %410, %413 : vector<8x128xf32>
    %415 = math.exp %414 : vector<8x128xf32>
    %cst_192 = arith.constant dense<0.000000e+00> : vector<8x128xf32>
    %416 = tpu.matmul %415, %2, %cst_192 {dimension_numbers = #tpu.dot_dimension_numbers<[1], [0], [0], [1], [0, 0, 1, 1], [], []>} : vector<8x128xf32>, vector<128x128xf32>, vector<8x128xf32> -> vector<8x128xf32>
    %cst_193 = arith.constant 9.99999991E-38 : f32
    %417 = vector.broadcast %cst_193 : f32 to vector<8x128xf32>
    %418 = arith.maximumf %416, %417 : vector<8x128xf32>
    %419 = vector.broadcast %412 : vector<8x1xf32> to vector<8x128xf32>
    %420 = arith.addf %391, %419 : vector<8x128xf32>
    %421 = vector.broadcast %5 : vector<1x1xf32> to vector<8x128xf32>
    %422 = arith.addf %420, %421 : vector<8x128xf32>
    %423 = math.log %418 : vector<8x128xf32>
    %424 = arith.addf %422, %423 : vector<8x128xf32>
    %425 = vector.broadcast %3 : vector<1x128xf32> to vector<8x128xf32>
    %426 = arith.addf %425, %391 : vector<8x128xf32>
    %c0_i32_194 = arith.constant 0 : i32
    %427 = arith.cmpi eq, %388, %c0_i32_194 : i32
    %428 = arith.select %427, %426, %424 : vector<8x128xf32>
    %c0_195 = arith.constant 0 : index
    %c0_196 = arith.constant 0 : index
    %429 = vector.load %arg12[%c0_195, %c0_196] : memref<8x128xf32, #tpu.memory_space<vmem>>, vector<8x128xf32>
    tpu.vector_store %arg12[%c0_195, %c0_196], %428 {strides = array<i32>} : memref<8x128xf32, #tpu.memory_space<vmem>>, vector<8x128xf32>,
    %c0_197 = arith.constant 0 : index
    %c0_198 = arith.constant 0 : index
    %430 = vector.load %arg13[%c0_197, %c0_198] : memref<8x128xf32, #tpu.memory_space<vmem>>, vector<8x128xf32>
    %431 = vector.shape_cast %402 : vector<8x1xi1> to vector<8x1xi1>
    %432 = vector.broadcast %431 : vector<8x1xi1> to vector<8x128xi1>
    %433 = arith.select %432, %428, %430 : vector<8x128xi1>, vector<8x128xf32>
    %c0_199 = arith.constant 0 : index
    %c0_200 = arith.constant 0 : index
    %434 = vector.load %arg13[%c0_199, %c0_200] : memref<8x128xf32, #tpu.memory_space<vmem>>, vector<8x128xf32>
    tpu.vector_store %arg13[%c0_199, %c0_200], %433 {strides = array<i32>} : memref<8x128xf32, #tpu.memory_space<vmem>>, vector<8x128xf32>,
    %435 = vector.broadcast %3 : vector<1x128xf32> to vector<8x128xf32>
    %436 = arith.addf %435, %391 : vector<8x128xf32>
    %437 = arith.mulf %398, %436 : vector<8x128xf32>
    %cst_201 = arith.constant dense<0.000000e+00> : vector<8xf32>
    %438 = vector.multi_reduction <add>, %437, %cst_201 [1] : vector<8x128xf32> to vector<8xf32>
    %439 = vector.shape_cast %438 : vector<8xf32> to vector<8x1xf32>
    %c0_202 = arith.constant 0 : index
    %c0_203 = arith.constant 0 : index
    %440 = vector.load %arg14[%c0_202, %c0_203] : memref<8x128xf32, #tpu.memory_space<vmem>>, vector<8x128xf32>
    %cst_204 = arith.constant dense<0.000000e+00> : vector<8x128xf32>
    %441 = tpu.matmul %440, %1, %cst_204 {dimension_numbers = #tpu.dot_dimension_numbers<[1], [0], [0], [1], [0, 0, 1, 1], [], []>} : vector<8x128xf32>, vector<128x128xf32>, vector<8x128xf32> -> vector<8x128xf32>
    %442 = arith.addf %391, %441 : vector<8x128xf32>
    %443 = arith.mulf %398, %442 : vector<8x128xf32>
    %cst_205 = arith.constant dense<0.000000e+00> : vector<8xf32>
    %444 = vector.multi_reduction <add>, %443, %cst_205 [1] : vector<8x128xf32> to vector<8xf32>
    %445 = vector.shape_cast %444 : vector<8xf32> to vector<8x1xf32>
    %446 = vector.broadcast %4 : vector<1x128xf32> to vector<8x128xf32>
    %447 = arith.mulf %398, %446 : vector<8x128xf32>
    %cst_206 = arith.constant dense<0.000000e+00> : vector<8xf32>
    %448 = vector.multi_reduction <add>, %447, %cst_206 [1] : vector<8x128xf32> to vector<8xf32>
    %449 = vector.shape_cast %448 : vector<8xf32> to vector<8x1xf32>
    %c0_i32_207 = arith.constant 0 : i32
    %450 = arith.cmpi eq, %388, %c0_i32_207 : i32
    %cst_208 = arith.constant 0.000000e+00 : f32
    %451 = vector.broadcast %cst_208 : f32 to vector<8x1xf32>
    %452 = arith.select %8, %439, %451 : vector<8x1xi1>, vector<8x1xf32>
    %453 = arith.mulf %409, %445 : vector<8x1xf32>
    %454 = arith.select %450, %452, %453 : vector<8x1xf32>
    %cst_209 = arith.constant 0.000000e+00 : f32
    %455 = vector.broadcast %cst_209 : f32 to vector<8x1xf32>
    %456 = arith.select %402, %449, %455 : vector<8x1xi1>, vector<8x1xf32>
    %457 = arith.addf %454, %456 : vector<8x1xf32>
    %c0_210 = arith.constant 0 : index
    %c0_211 = arith.constant 0 : index
    %458 = vector.load %arg15[%c0_210, %c0_211] : memref<8x1xf32, #tpu.memory_space<vmem>>, vector<8x1xf32>
    %459 = arith.addf %458, %457 : vector<8x1xf32>
    %c0_212 = arith.constant 0 : index
    %c0_213 = arith.constant 0 : index
    %460 = vector.load %arg15[%c0_212, %c0_213] : memref<8x1xf32, #tpu.memory_space<vmem>>, vector<8x1xf32>
    tpu.vector_store %arg15[%c0_212, %c0_213], %459 {strides = array<i32>} : memref<8x1xf32, #tpu.memory_space<vmem>>, vector<8x1xf32>,
    %c0_214 = arith.constant 0 : index
    %c0_215 = arith.constant 0 : index
    %461 = vector.load %arg14[%c0_214, %c0_215] : memref<8x128xf32, #tpu.memory_space<vmem>>, vector<8x128xf32>
    tpu.vector_store %arg14[%c0_214, %c0_215], %398 {strides = array<i32>} : memref<8x128xf32, #tpu.memory_space<vmem>>, vector<8x128xf32>,
    %c6_i32 = arith.constant 6 : i32
    %c8_i32_216 = arith.constant 8 : i32
    %462 = arith.muli %arg1, %c8_i32_216 : i32
    %463 = arith.addi %462, %c6_i32 : i32
    %464 = arith.index_cast %c6_i32 : i32 to index
    %c0_217 = arith.constant 0 : index
    %c0_218 = arith.constant 0 : index
    %465 = vector.load %arg4[%464, %c0_217, %c0_218] : memref<8x8x128xf32, #tpu.memory_space<vmem>>, vector<1x8x128xf32>
    %466 = vector.shape_cast %465 : vector<1x8x128xf32> to vector<8x128xf32>
    %467 = arith.index_cast %c6_i32 : i32 to index
    %c0_219 = arith.constant 0 : index
    %c0_220 = arith.constant 0 : index
    %468 = vector.load %arg3[%467, %c0_219, %c0_220] : memref<8x8x1xi32, #tpu.memory_space<vmem>>, vector<1x8x1xi32>
    %469 = vector.shape_cast %468 : vector<1x8x1xi32> to vector<8x1xi32>
    %470 = vector.broadcast %469 : vector<8x1xi32> to vector<8x128xi32>
    %471 = arith.cmpi eq, %6, %470 : vector<8x128xi32>
    %472 = arith.extui %471 : vector<8x128xi1> to vector<8x128xi32>
    %473 = arith.sitofp %472 : vector<8x128xi32> to vector<8x128xf32>
    %c1_i32_221 = arith.constant 1 : i32
    %474 = vector.broadcast %c1_i32_221 : i32 to vector<8x1xi32>
    %475 = arith.subi %0, %474 : vector<8x1xi32>
    %476 = vector.broadcast %463 : i32 to vector<8x1xi32>
    %477 = arith.cmpi eq, %475, %476 : vector<8x1xi32>
    %478 = vector.broadcast %463 : i32 to vector<8x1xi32>
    %479 = arith.cmpi slt, %478, %0 : vector<8x1xi32>
    %c0_i32_222 = arith.constant 0 : i32
    %480 = arith.cmpi sgt, %463, %c0_i32_222 : i32
    %481 = vector.broadcast %480 : i1 to vector<8x1xi1>
    %482 = arith.andi %479, %481 : vector<8x1xi1>
    %483 = arith.extui %482 : vector<8x1xi1> to vector<8x1xi32>
    %484 = arith.sitofp %483 : vector<8x1xi32> to vector<8x1xf32>
    %c0_223 = arith.constant 0 : index
    %c0_224 = arith.constant 0 : index
    %485 = vector.load %arg12[%c0_223, %c0_224] : memref<8x128xf32, #tpu.memory_space<vmem>>, vector<8x128xf32>
    %cst_225 = arith.constant dense<0xFF800000> : vector<8xf32>
    %486 = vector.multi_reduction <maximumf>, %485, %cst_225 [1] : vector<8x128xf32> to vector<8xf32>
    %487 = vector.shape_cast %486 : vector<8xf32> to vector<8x1xf32>
    %488 = vector.broadcast %487 : vector<8x1xf32> to vector<8x128xf32>
    %489 = arith.subf %485, %488 : vector<8x128xf32>
    %490 = math.exp %489 : vector<8x128xf32>
    %cst_226 = arith.constant dense<0.000000e+00> : vector<8x128xf32>
    %491 = tpu.matmul %490, %2, %cst_226 {dimension_numbers = #tpu.dot_dimension_numbers<[1], [0], [0], [1], [0, 0, 1, 1], [], []>} : vector<8x128xf32>, vector<128x128xf32>, vector<8x128xf32> -> vector<8x128xf32>
    %cst_227 = arith.constant 9.99999991E-38 : f32
    %492 = vector.broadcast %cst_227 : f32 to vector<8x128xf32>
    %493 = arith.maximumf %491, %492 : vector<8x128xf32>
    %494 = vector.broadcast %487 : vector<8x1xf32> to vector<8x128xf32>
    %495 = arith.addf %466, %494 : vector<8x128xf32>
    %496 = vector.broadcast %5 : vector<1x1xf32> to vector<8x128xf32>
    %497 = arith.addf %495, %496 : vector<8x128xf32>
    %498 = math.log %493 : vector<8x128xf32>
    %499 = arith.addf %497, %498 : vector<8x128xf32>
    %500 = vector.broadcast %3 : vector<1x128xf32> to vector<8x128xf32>
    %501 = arith.addf %500, %466 : vector<8x128xf32>
    %c0_i32_228 = arith.constant 0 : i32
    %502 = arith.cmpi eq, %463, %c0_i32_228 : i32
    %503 = arith.select %502, %501, %499 : vector<8x128xf32>
    %c0_229 = arith.constant 0 : index
    %c0_230 = arith.constant 0 : index
    %504 = vector.load %arg12[%c0_229, %c0_230] : memref<8x128xf32, #tpu.memory_space<vmem>>, vector<8x128xf32>
    tpu.vector_store %arg12[%c0_229, %c0_230], %503 {strides = array<i32>} : memref<8x128xf32, #tpu.memory_space<vmem>>, vector<8x128xf32>,
    %c0_231 = arith.constant 0 : index
    %c0_232 = arith.constant 0 : index
    %505 = vector.load %arg13[%c0_231, %c0_232] : memref<8x128xf32, #tpu.memory_space<vmem>>, vector<8x128xf32>
    %506 = vector.shape_cast %477 : vector<8x1xi1> to vector<8x1xi1>
    %507 = vector.broadcast %506 : vector<8x1xi1> to vector<8x128xi1>
    %508 = arith.select %507, %503, %505 : vector<8x128xi1>, vector<8x128xf32>
    %c0_233 = arith.constant 0 : index
    %c0_234 = arith.constant 0 : index
    %509 = vector.load %arg13[%c0_233, %c0_234] : memref<8x128xf32, #tpu.memory_space<vmem>>, vector<8x128xf32>
    tpu.vector_store %arg13[%c0_233, %c0_234], %508 {strides = array<i32>} : memref<8x128xf32, #tpu.memory_space<vmem>>, vector<8x128xf32>,
    %510 = vector.broadcast %3 : vector<1x128xf32> to vector<8x128xf32>
    %511 = arith.addf %510, %466 : vector<8x128xf32>
    %512 = arith.mulf %473, %511 : vector<8x128xf32>
    %cst_235 = arith.constant dense<0.000000e+00> : vector<8xf32>
    %513 = vector.multi_reduction <add>, %512, %cst_235 [1] : vector<8x128xf32> to vector<8xf32>
    %514 = vector.shape_cast %513 : vector<8xf32> to vector<8x1xf32>
    %c0_236 = arith.constant 0 : index
    %c0_237 = arith.constant 0 : index
    %515 = vector.load %arg14[%c0_236, %c0_237] : memref<8x128xf32, #tpu.memory_space<vmem>>, vector<8x128xf32>
    %cst_238 = arith.constant dense<0.000000e+00> : vector<8x128xf32>
    %516 = tpu.matmul %515, %1, %cst_238 {dimension_numbers = #tpu.dot_dimension_numbers<[1], [0], [0], [1], [0, 0, 1, 1], [], []>} : vector<8x128xf32>, vector<128x128xf32>, vector<8x128xf32> -> vector<8x128xf32>
    %517 = arith.addf %466, %516 : vector<8x128xf32>
    %518 = arith.mulf %473, %517 : vector<8x128xf32>
    %cst_239 = arith.constant dense<0.000000e+00> : vector<8xf32>
    %519 = vector.multi_reduction <add>, %518, %cst_239 [1] : vector<8x128xf32> to vector<8xf32>
    %520 = vector.shape_cast %519 : vector<8xf32> to vector<8x1xf32>
    %521 = vector.broadcast %4 : vector<1x128xf32> to vector<8x128xf32>
    %522 = arith.mulf %473, %521 : vector<8x128xf32>
    %cst_240 = arith.constant dense<0.000000e+00> : vector<8xf32>
    %523 = vector.multi_reduction <add>, %522, %cst_240 [1] : vector<8x128xf32> to vector<8xf32>
    %524 = vector.shape_cast %523 : vector<8xf32> to vector<8x1xf32>
    %c0_i32_241 = arith.constant 0 : i32
    %525 = arith.cmpi eq, %463, %c0_i32_241 : i32
    %cst_242 = arith.constant 0.000000e+00 : f32
    %526 = vector.broadcast %cst_242 : f32 to vector<8x1xf32>
    %527 = arith.select %8, %514, %526 : vector<8x1xi1>, vector<8x1xf32>
    %528 = arith.mulf %484, %520 : vector<8x1xf32>
    %529 = arith.select %525, %527, %528 : vector<8x1xf32>
    %cst_243 = arith.constant 0.000000e+00 : f32
    %530 = vector.broadcast %cst_243 : f32 to vector<8x1xf32>
    %531 = arith.select %477, %524, %530 : vector<8x1xi1>, vector<8x1xf32>
    %532 = arith.addf %529, %531 : vector<8x1xf32>
    %c0_244 = arith.constant 0 : index
    %c0_245 = arith.constant 0 : index
    %533 = vector.load %arg15[%c0_244, %c0_245] : memref<8x1xf32, #tpu.memory_space<vmem>>, vector<8x1xf32>
    %534 = arith.addf %533, %532 : vector<8x1xf32>
    %c0_246 = arith.constant 0 : index
    %c0_247 = arith.constant 0 : index
    %535 = vector.load %arg15[%c0_246, %c0_247] : memref<8x1xf32, #tpu.memory_space<vmem>>, vector<8x1xf32>
    tpu.vector_store %arg15[%c0_246, %c0_247], %534 {strides = array<i32>} : memref<8x1xf32, #tpu.memory_space<vmem>>, vector<8x1xf32>,
    %c0_248 = arith.constant 0 : index
    %c0_249 = arith.constant 0 : index
    %536 = vector.load %arg14[%c0_248, %c0_249] : memref<8x128xf32, #tpu.memory_space<vmem>>, vector<8x128xf32>
    tpu.vector_store %arg14[%c0_248, %c0_249], %473 {strides = array<i32>} : memref<8x128xf32, #tpu.memory_space<vmem>>, vector<8x128xf32>,
    %c7_i32 = arith.constant 7 : i32
    %c8_i32_250 = arith.constant 8 : i32
    %537 = arith.muli %arg1, %c8_i32_250 : i32
    %538 = arith.addi %537, %c7_i32 : i32
    %539 = arith.index_cast %c7_i32 : i32 to index
    %c0_251 = arith.constant 0 : index
    %c0_252 = arith.constant 0 : index
    %540 = vector.load %arg4[%539, %c0_251, %c0_252] : memref<8x8x128xf32, #tpu.memory_space<vmem>>, vector<1x8x128xf32>
    %541 = vector.shape_cast %540 : vector<1x8x128xf32> to vector<8x128xf32>
    %542 = arith.index_cast %c7_i32 : i32 to index
    %c0_253 = arith.constant 0 : index
    %c0_254 = arith.constant 0 : index
    %543 = vector.load %arg3[%542, %c0_253, %c0_254] : memref<8x8x1xi32, #tpu.memory_space<vmem>>, vector<1x8x1xi32>
    %544 = vector.shape_cast %543 : vector<1x8x1xi32> to vector<8x1xi32>
    %545 = vector.broadcast %544 : vector<8x1xi32> to vector<8x128xi32>
    %546 = arith.cmpi eq, %6, %545 : vector<8x128xi32>
    %547 = arith.extui %546 : vector<8x128xi1> to vector<8x128xi32>
    %548 = arith.sitofp %547 : vector<8x128xi32> to vector<8x128xf32>
    %c1_i32_255 = arith.constant 1 : i32
    %549 = vector.broadcast %c1_i32_255 : i32 to vector<8x1xi32>
    %550 = arith.subi %0, %549 : vector<8x1xi32>
    %551 = vector.broadcast %538 : i32 to vector<8x1xi32>
    %552 = arith.cmpi eq, %550, %551 : vector<8x1xi32>
    %553 = vector.broadcast %538 : i32 to vector<8x1xi32>
    %554 = arith.cmpi slt, %553, %0 : vector<8x1xi32>
    %c0_i32_256 = arith.constant 0 : i32
    %555 = arith.cmpi sgt, %538, %c0_i32_256 : i32
    %556 = vector.broadcast %555 : i1 to vector<8x1xi1>
    %557 = arith.andi %554, %556 : vector<8x1xi1>
    %558 = arith.extui %557 : vector<8x1xi1> to vector<8x1xi32>
    %559 = arith.sitofp %558 : vector<8x1xi32> to vector<8x1xf32>
    %c0_257 = arith.constant 0 : index
    %c0_258 = arith.constant 0 : index
    %560 = vector.load %arg12[%c0_257, %c0_258] : memref<8x128xf32, #tpu.memory_space<vmem>>, vector<8x128xf32>
    %cst_259 = arith.constant dense<0xFF800000> : vector<8xf32>
    %561 = vector.multi_reduction <maximumf>, %560, %cst_259 [1] : vector<8x128xf32> to vector<8xf32>
    %562 = vector.shape_cast %561 : vector<8xf32> to vector<8x1xf32>
    %563 = vector.broadcast %562 : vector<8x1xf32> to vector<8x128xf32>
    %564 = arith.subf %560, %563 : vector<8x128xf32>
    %565 = math.exp %564 : vector<8x128xf32>
    %cst_260 = arith.constant dense<0.000000e+00> : vector<8x128xf32>
    %566 = tpu.matmul %565, %2, %cst_260 {dimension_numbers = #tpu.dot_dimension_numbers<[1], [0], [0], [1], [0, 0, 1, 1], [], []>} : vector<8x128xf32>, vector<128x128xf32>, vector<8x128xf32> -> vector<8x128xf32>
    %cst_261 = arith.constant 9.99999991E-38 : f32
    %567 = vector.broadcast %cst_261 : f32 to vector<8x128xf32>
    %568 = arith.maximumf %566, %567 : vector<8x128xf32>
    %569 = vector.broadcast %562 : vector<8x1xf32> to vector<8x128xf32>
    %570 = arith.addf %541, %569 : vector<8x128xf32>
    %571 = vector.broadcast %5 : vector<1x1xf32> to vector<8x128xf32>
    %572 = arith.addf %570, %571 : vector<8x128xf32>
    %573 = math.log %568 : vector<8x128xf32>
    %574 = arith.addf %572, %573 : vector<8x128xf32>
    %575 = vector.broadcast %3 : vector<1x128xf32> to vector<8x128xf32>
    %576 = arith.addf %575, %541 : vector<8x128xf32>
    %c0_i32_262 = arith.constant 0 : i32
    %577 = arith.cmpi eq, %538, %c0_i32_262 : i32
    %578 = arith.select %577, %576, %574 : vector<8x128xf32>
    %c0_263 = arith.constant 0 : index
    %c0_264 = arith.constant 0 : index
    %579 = vector.load %arg12[%c0_263, %c0_264] : memref<8x128xf32, #tpu.memory_space<vmem>>, vector<8x128xf32>
    tpu.vector_store %arg12[%c0_263, %c0_264], %578 {strides = array<i32>} : memref<8x128xf32, #tpu.memory_space<vmem>>, vector<8x128xf32>,
    %c0_265 = arith.constant 0 : index
    %c0_266 = arith.constant 0 : index
    %580 = vector.load %arg13[%c0_265, %c0_266] : memref<8x128xf32, #tpu.memory_space<vmem>>, vector<8x128xf32>
    %581 = vector.shape_cast %552 : vector<8x1xi1> to vector<8x1xi1>
    %582 = vector.broadcast %581 : vector<8x1xi1> to vector<8x128xi1>
    %583 = arith.select %582, %578, %580 : vector<8x128xi1>, vector<8x128xf32>
    %c0_267 = arith.constant 0 : index
    %c0_268 = arith.constant 0 : index
    %584 = vector.load %arg13[%c0_267, %c0_268] : memref<8x128xf32, #tpu.memory_space<vmem>>, vector<8x128xf32>
    tpu.vector_store %arg13[%c0_267, %c0_268], %583 {strides = array<i32>} : memref<8x128xf32, #tpu.memory_space<vmem>>, vector<8x128xf32>,
    %585 = vector.broadcast %3 : vector<1x128xf32> to vector<8x128xf32>
    %586 = arith.addf %585, %541 : vector<8x128xf32>
    %587 = arith.mulf %548, %586 : vector<8x128xf32>
    %cst_269 = arith.constant dense<0.000000e+00> : vector<8xf32>
    %588 = vector.multi_reduction <add>, %587, %cst_269 [1] : vector<8x128xf32> to vector<8xf32>
    %589 = vector.shape_cast %588 : vector<8xf32> to vector<8x1xf32>
    %c0_270 = arith.constant 0 : index
    %c0_271 = arith.constant 0 : index
    %590 = vector.load %arg14[%c0_270, %c0_271] : memref<8x128xf32, #tpu.memory_space<vmem>>, vector<8x128xf32>
    %cst_272 = arith.constant dense<0.000000e+00> : vector<8x128xf32>
    %591 = tpu.matmul %590, %1, %cst_272 {dimension_numbers = #tpu.dot_dimension_numbers<[1], [0], [0], [1], [0, 0, 1, 1], [], []>} : vector<8x128xf32>, vector<128x128xf32>, vector<8x128xf32> -> vector<8x128xf32>
    %592 = arith.addf %541, %591 : vector<8x128xf32>
    %593 = arith.mulf %548, %592 : vector<8x128xf32>
    %cst_273 = arith.constant dense<0.000000e+00> : vector<8xf32>
    %594 = vector.multi_reduction <add>, %593, %cst_273 [1] : vector<8x128xf32> to vector<8xf32>
    %595 = vector.shape_cast %594 : vector<8xf32> to vector<8x1xf32>
    %596 = vector.broadcast %4 : vector<1x128xf32> to vector<8x128xf32>
    %597 = arith.mulf %548, %596 : vector<8x128xf32>
    %cst_274 = arith.constant dense<0.000000e+00> : vector<8xf32>
    %598 = vector.multi_reduction <add>, %597, %cst_274 [1] : vector<8x128xf32> to vector<8xf32>
    %599 = vector.shape_cast %598 : vector<8xf32> to vector<8x1xf32>
    %c0_i32_275 = arith.constant 0 : i32
    %600 = arith.cmpi eq, %538, %c0_i32_275 : i32
    %cst_276 = arith.constant 0.000000e+00 : f32
    %601 = vector.broadcast %cst_276 : f32 to vector<8x1xf32>
    %602 = arith.select %8, %589, %601 : vector<8x1xi1>, vector<8x1xf32>
    %603 = arith.mulf %559, %595 : vector<8x1xf32>
    %604 = arith.select %600, %602, %603 : vector<8x1xf32>
    %cst_277 = arith.constant 0.000000e+00 : f32
    %605 = vector.broadcast %cst_277 : f32 to vector<8x1xf32>
    %606 = arith.select %552, %599, %605 : vector<8x1xi1>, vector<8x1xf32>
    %607 = arith.addf %604, %606 : vector<8x1xf32>
    %c0_278 = arith.constant 0 : index
    %c0_279 = arith.constant 0 : index
    %608 = vector.load %arg15[%c0_278, %c0_279] : memref<8x1xf32, #tpu.memory_space<vmem>>, vector<8x1xf32>
    %609 = arith.addf %608, %607 : vector<8x1xf32>
    %c0_280 = arith.constant 0 : index
    %c0_281 = arith.constant 0 : index
    %610 = vector.load %arg15[%c0_280, %c0_281] : memref<8x1xf32, #tpu.memory_space<vmem>>, vector<8x1xf32>
    tpu.vector_store %arg15[%c0_280, %c0_281], %609 {strides = array<i32>} : memref<8x1xf32, #tpu.memory_space<vmem>>, vector<8x1xf32>,
    %c0_282 = arith.constant 0 : index
    %c0_283 = arith.constant 0 : index
    %611 = vector.load %arg14[%c0_282, %c0_283] : memref<8x128xf32, #tpu.memory_space<vmem>>, vector<8x128xf32>
    tpu.vector_store %arg14[%c0_282, %c0_283], %548 {strides = array<i32>} : memref<8x128xf32, #tpu.memory_space<vmem>>, vector<8x128xf32>,
    %c8_i32_284 = arith.constant 8 : i32
    %c0_i32_285 = arith.constant 0 : i32
    %612 = arith.cmpi eq, %arg1, %c0_i32_285 : i32
    %613 = arith.extui %612 : i1 to i32
    %c0_i32_286 = arith.constant 0 : i32
    %614 = arith.cmpi ne, %613, %c0_i32_286 : i32
    scf.if %614 {
      %c0_287 = arith.constant 0 : index
      %c0_288 = arith.constant 0 : index
      %615 = vector.load %arg13[%c0_287, %c0_288] : memref<8x128xf32, #tpu.memory_space<vmem>>, vector<8x128xf32>
      %616 = vector.broadcast %4 : vector<1x128xf32> to vector<8x128xf32>
      %617 = arith.addf %615, %616 : vector<8x128xf32>
      %cst_289 = arith.constant dense<0xFF800000> : vector<8xf32>
      %618 = vector.multi_reduction <maximumf>, %617, %cst_289 [1] : vector<8x128xf32> to vector<8xf32>
      %619 = vector.shape_cast %618 : vector<8xf32> to vector<8x1xf32>
      %620 = vector.broadcast %619 : vector<8x1xf32> to vector<8x128xf32>
      %621 = arith.subf %617, %620 : vector<8x128xf32>
      %622 = math.exp %621 : vector<8x128xf32>
      %cst_290 = arith.constant dense<0.000000e+00> : vector<8xf32>
      %623 = vector.multi_reduction <add>, %622, %cst_290 [1] : vector<8x128xf32> to vector<8xf32>
      %624 = vector.shape_cast %623 : vector<8xf32> to vector<8x1xf32>
      %625 = math.log %624 : vector<8x1xf32>
      %626 = arith.addf %619, %625 : vector<8x1xf32>
      %cst_291 = arith.constant 0.000000e+00 : f32
      %627 = vector.broadcast %cst_291 : f32 to vector<8x1xf32>
      %628 = arith.select %8, %626, %627 : vector<8x1xi1>, vector<8x1xf32>
      %629 = vector.shape_cast %628 : vector<8x1xf32> to vector<1x8x1xf32>
      %cst_292 = arith.constant dense<0.000000e+00> : vector<1xf32>
      %630 = vector.multi_reduction <add>, %629, %cst_292 [1, 2] : vector<1x8x1xf32> to vector<1xf32>
      %631 = vector.shape_cast %630 : vector<1xf32> to vector<1x1x1xf32>
      %632 = vector.extract %631[0, 0, 0] : f32 from vector<1x1x1xf32>
      %633 = vector.broadcast %632 : f32 to vector<1x1x1xf32>
      %c0_293 = arith.constant 0 : index
      %c0_294 = arith.constant 0 : index
      %c0_295 = arith.constant 0 : index
      %634 = vector.load %arg10[%c0_293, %c0_294, %c0_295] : memref<1x1x1xf32, #tpu.memory_space<vmem>>, vector<1x1x1xf32>
      tpu.vector_store %arg10[%c0_293, %c0_294, %c0_295], %633 {strides = array<i32>} : memref<1x1x1xf32, #tpu.memory_space<vmem>>, vector<1x1x1xf32>,
      %c0_296 = arith.constant 0 : index
      %c0_297 = arith.constant 0 : index
      %635 = vector.load %arg15[%c0_296, %c0_297] : memref<8x1xf32, #tpu.memory_space<vmem>>, vector<8x1xf32>
      %636 = vector.shape_cast %635 : vector<8x1xf32> to vector<1x8x1xf32>
      %cst_298 = arith.constant dense<0.000000e+00> : vector<1xf32>
      %637 = vector.multi_reduction <add>, %636, %cst_298 [1, 2] : vector<1x8x1xf32> to vector<1xf32>
      %638 = vector.shape_cast %637 : vector<1xf32> to vector<1x1x1xf32>
      %639 = vector.extract %638[0, 0, 0] : f32 from vector<1x1x1xf32>
      %640 = vector.broadcast %639 : f32 to vector<1x1x1xf32>
      %c0_299 = arith.constant 0 : index
      %c0_300 = arith.constant 0 : index
      %c0_301 = arith.constant 0 : index
      %641 = vector.load %arg11[%c0_299, %c0_300, %c0_301] : memref<1x1x1xf32, #tpu.memory_space<vmem>>, vector<1x1x1xf32>
      tpu.vector_store %arg11[%c0_299, %c0_300, %c0_301], %640 {strides = array<i32>} : memref<1x1x1xf32, #tpu.memory_space<vmem>>, vector<1x1x1xf32>,
    } else {
    }
    return
  }
  func.func @transform_0(%arg0: i32, %arg1: i32) -> (i32, i32) {
    %c0_i32 = arith.constant 0 : i32
    %c0_i32_0 = arith.constant 0 : i32
    return %arg0, %c0_i32 : i32, i32
  }
  func.func @transform_1(%arg0: i32, %arg1: i32) -> (i32, i32, i32) {
    %c0_i32 = arith.constant 0 : i32
    %c0_i32_0 = arith.constant 0 : i32
    return %arg1, %arg0, %c0_i32 : i32, i32, i32
  }
  func.func @transform_2(%arg0: i32, %arg1: i32) -> (i32, i32, i32) {
    %c0_i32 = arith.constant 0 : i32
    %c0_i32_0 = arith.constant 0 : i32
    return %arg1, %arg0, %c0_i32 : i32, i32, i32
  }
  func.func @transform_3(%arg0: i32, %arg1: i32) -> (i32, i32) {
    %c0_i32 = arith.constant 0 : i32
    %c0_i32_0 = arith.constant 0 : i32
    %c0_i32_1 = arith.constant 0 : i32
    return %c0_i32, %c0_i32_0 : i32, i32
  }
  func.func @transform_4(%arg0: i32, %arg1: i32) -> (i32, i32) {
    %c0_i32 = arith.constant 0 : i32
    %c0_i32_0 = arith.constant 0 : i32
    %c0_i32_1 = arith.constant 0 : i32
    return %c0_i32, %c0_i32_0 : i32, i32
  }
  func.func @transform_5(%arg0: i32, %arg1: i32) -> (i32, i32) {
    %c0_i32 = arith.constant 0 : i32
    %c0_i32_0 = arith.constant 0 : i32
    %c0_i32_1 = arith.constant 0 : i32
    return %c0_i32, %c0_i32_0 : i32, i32
  }
  func.func @transform_6(%arg0: i32, %arg1: i32) -> (i32, i32) {
    %c0_i32 = arith.constant 0 : i32
    %c0_i32_0 = arith.constant 0 : i32
    %c0_i32_1 = arith.constant 0 : i32
    return %c0_i32, %c0_i32_0 : i32, i32
  }
  func.func @transform_7(%arg0: i32, %arg1: i32) -> (i32, i32) {
    %c0_i32 = arith.constant 0 : i32
    %c0_i32_0 = arith.constant 0 : i32
    %c0_i32_1 = arith.constant 0 : i32
    return %c0_i32, %c0_i32_0 : i32, i32
  }
  func.func @transform_8(%arg0: i32, %arg1: i32) -> (i32, i32, i32) {
    %c0_i32 = arith.constant 0 : i32
    %c0_i32_0 = arith.constant 0 : i32
    %c0_i32_1 = arith.constant 0 : i32
    return %arg0, %c0_i32, %c0_i32_0 : i32, i32, i32
  }
  func.func @transform_9(%arg0: i32, %arg1: i32) -> (i32, i32, i32) {
    %c0_i32 = arith.constant 0 : i32
    %c0_i32_0 = arith.constant 0 : i32
    %c0_i32_1 = arith.constant 0 : i32
    return %arg0, %c0_i32, %c0_i32_0 : i32, i32, i32
  }
}

</mosaic_0001>

<bundles_post_ra>
// kernel: tpu_custom_call.1
= control target key start
LH: loop header
LB: loop body
LE: loop exit
PB: predicated region body
PF: predicated region fallthrough
CT: control target
= control target key end

     0   :  { %s4043_s0 = inlined_call_operand.vmem [shape: s32[8,1], index: 0, kind: input, shape index: {}]   ;;  %s4044_s1 = inlined_call_operand.vmem [shape: s32[8,8,1], index: 1, kind: input, shape index: {}]   ;;  %s4045_s2 = inlined_call_operand.vmem [shape: f32[8,8,128], index: 2, kind: input, shape index: {}]   ;;  %s4046_s3 = inlined_call_operand.hbm [shape: f32[128,128], index: 3, kind: input, shape index: {}]   ;;  %s4047_s4 = inlined_call_operand.hbm [shape: f32[128,128], index: 4, kind: input, shape index: {}]   ;;  %s4048_s5 = inlined_call_operand.vmem [shape: f32[1,128], index: 5, kind: input, shape index: {}]   ;;  %s4049_s6 = inlined_call_operand.vmem [shape: f32[1,128], index: 6, kind: input, shape index: {}]   ;;  %s4050_s7 = inlined_call_operand.<no memory space> [shape: f32[1,1], index: 7, kind: input, shape index: {}]   ;;  %s4051_s8 = inlined_call_operand.hbm [shape: f32[1,1,1], index: 8, kind: output, shape index: {0}]   ;;  %s4052_s9 = inlined_call_operand.hbm [shape: f32[1,1,1], index: 9, kind: output, shape index: {1}]  }
   0x1   :  { %v15_v0 = vstv %s4050_s7 }
   0x2   :  { %16 = vst [vmem:[#allocation6] sm:$0x1] %v15_v0 }
   0x3   :  { %17 = vsyncpa [#allocation8], 0 }
   0x4   :  { %18 = vsyncpa [#allocation11], 0 }
   0x5   :  { %19 = vsyncpa [#allocation9], 0 }
   0x6   :  { %20 = vsyncpa [#allocation14], 0  ;;  %s3279_s11 = smov [#allocation7]   ;;  %s3183_s15 = scalar_lea.hbm %s4046_s3, 2048 }
   0x7   :  { %s32_s12 = sshll.u32 %s3279_s11, 4  ;;  %p3184_p0 = scmp.ne.s32.totalorder %s4046_s3, %s3183_s15  ;;  %s33_s12 = int_to_ptr.vmem [resolvable:$true] %s32_s12 }
   0x8   :  { %p3187_p1 = scmp.lt.u32.totalorder %s3183_s15, %s4046_s3 }
   0xa   :  { %p3189_p2 = pnand %p3187_p1, %p3184_p0 }
   0xc   :  { %3192 = shalt.err (!%p3189_p2)
}
   0xd   :  { %s3193_s7 = scalar_lea.vmem %s33_s12, 2048  ;;  %p3198_p4 = scmp.lt.s32.totalorder %s33_s12, %s33_s12 }
   0xe   :  { %p3194_p3 = scmp.ne.s32.totalorder %s33_s12, %s3193_s7  ;;  %p3199_p5 = scmp.lt.s32.totalorder %s3193_s7, %s3193_s7 }
  0x10   :  { %p3200_p6 = por %p3199_p5, %p3198_p4 }
  0x12   :  { %p3201_p7 = pnand %p3200_p6, %p3194_p3 }
  0x14   :  { %3204 = shalt.err (!%p3201_p7)
}
  0x15   :  { %s3280_s20 = smov 128   ;;  %s3281_s21 = smov 8  }
  0x16   :  { %38 = dma.hbm_to_vmem [thread:$0]  %s4046_s3, 2048, %s33_s12, [#allocation8], %s3280_s20, %s3280_s20, %s3281_s21  }
  0x17   :  { %s3282_s24 = smov [#allocation10]   ;;  %s3205_s28 = scalar_lea.hbm %s4047_s4, 2048 }
  0x18   :  { %s44_s25 = sshll.u32 %s3282_s24, 4  ;;  %p3206_p8 = scmp.ne.s32.totalorder %s4047_s4, %s3205_s28  ;;  %s45_s25 = int_to_ptr.vmem [resolvable:$true] %s44_s25 }
  0x19   :  { %p3209_p9 = scmp.lt.u32.totalorder %s3205_s28, %s4047_s4 }
  0x1b   :  { %p3211_p10 = pnand %p3209_p9, %p3206_p8 }
  0x1d   :  { %3214 = shalt.err (!%p3211_p10)
}
  0x1e   :  { %s3215_s13 = scalar_lea.vmem %s45_s25, 2048  ;;  %p3220_p12 = scmp.lt.s32.totalorder %s45_s25, %s45_s25 }
  0x1f   :  { %p3216_p11 = scmp.ne.s32.totalorder %s45_s25, %s3215_s13  ;;  %p3221_p13 = scmp.lt.s32.totalorder %s3215_s13, %s3215_s13 }
  0x21   :  { %p3222_p0 = por %p3221_p13, %p3220_p12 }
  0x23   :  { %p3223_p1 = pnand %p3222_p0, %p3216_p11 }
  0x25   :  { %3226 = shalt.err (!%p3223_p1)
}
  0x26   :  { %50 = dma.hbm_to_vmem [thread:$0]  %s4047_s4, 2048, %s45_s25, [#allocation11], %s3280_s20, %s3280_s20, %s3281_s21  }
  0x27   :  { %3271 = dma.done.wait [#allocation8], 2048  }
  0x28   :  { %3272 = vsyncadd [#allocation8], 4294965248 }
  0x29   :  { %3273 = dma.done.wait [#allocation11], 2048  }
  0x2a   :  { %3274 = vsyncadd [#allocation11], 4294965248  ;;  %v3283_v1 = vmov 0.0   ;;  %v3284_v2 = vmov 0   ;;  %v3285_v3 = vmov 0.0|0.0   ;;  %v112_v5 = vld [vmem:[%s4045_s2] sm:$0xff] }
  0x2b   :  { %132 = vmax.xlane.f32.xlu0 %v3283_v1  ;;  %3147 = vset.pattern.permute.xlu1 %v3284_v2  ;;  %v1872_v4 = vld [vmem:[%s4048_s5] ss:$0 sm:$0xff]  ;;  %v1871_v6 = vld [vmem:[#allocation6] ss:$0 sm:$0xff]  ;;  %v80_v8 = vld [vmem:[#allocation10] sm:$0xff]  ;;  %vm3286_vm0 = vmmov 0  }
  0x2c   :  { %2748 = vmatprep.subr.bf16.mxu0 %v3285_v3  ;;  %3148 = vset.pattern.permute.xlu0 %v3284_v2  ;;  %v3378_v7 = vadd.f32 %v1872_v4, %v112_v5  ;;  %v81_v9 = vld [vmem:[#allocation10 + $0x8] sm:$0xff]  ;;  %v82_v10 = vld [vmem:[#allocation10 + $0x10] sm:$0xff]  ;;  %v83_v12 = vld [vmem:[#allocation10 + $0x18] sm:$0xff]  ;;  %vm109_vm8 = vcmask 7168   ;;  %s3289_s22 = smov [#allocation13]  }
  0x2d   :  { %2772 = vmatprep.subr.bf16.mxu1 %v3285_v3  ;;  %215 = vperm.xlu1 %3147, %v1871_v6   ;;  %v3380_v11 = vpack.c.bf16 %v81_v9, %v80_v8  ;;  %v3384_v13 = vpack.c.bf16 %v83_v12, %v82_v10  ;;  %v84_v14 = vld [vmem:[#allocation10 + $0x20] sm:$0xff]  ;;  %v85_v15 = vld [vmem:[#allocation10 + $0x28] sm:$0xff]  ;;  %v86_v17 = vld [vmem:[#allocation10 + $0x30] sm:$0xff]  ;;  %110 = vst.msk [vmem:[#allocation5] sm:$0xff] %vm109_vm8, %v3283_v1  ;;  %s1854_s23 = sshll.u32 %s3289_s22, 4  ;;  %s4009_s23 = int_to_ptr.vmem [resolvable:$true] %s1854_s23 }
  0x2e   :  { %v3388_v16 = vpack.c.bf16 %v85_v15, %v84_v14  ;;  %v87_v18 = vld [vmem:[#allocation10 + $0x38] sm:$0xff]  ;;  %v88_v20 = vld [vmem:[#allocation10 + $0x40] sm:$0xff]  ;;  %v89_v21 = vld [vmem:[#allocation10 + $0x48] sm:$0xff]  ;;  %2220 = vmatprep.mubr.msk.f32.mxu0 %vm3286_vm0, %v3283_v1  ;;  %2255 = vmatprep.mubr.msk.f32.mxu1 %vm3286_vm0, %v3283_v1 }
  0x2f   :  { %362 = vmax.xlane.f32.xlu0 %v3378_v7  ;;  %2750 = vmatpush3.bf16.msra.mxu0 %v3380_v11  ;;  %v3392_v19 = vpack.c.bf16 %v87_v18, %v86_v17  ;;  %v3400_v22 = vpack.c.bf16 %v89_v21, %v88_v20  ;;  %v90_v23 = vld [vmem:[#allocation10 + $0x50] sm:$0xff]  ;;  %v91_v24 = vld [vmem:[#allocation10 + $0x58] sm:$0xff]  ;;  %v92_v26 = vld [vmem:[#allocation10 + $0x60] sm:$0xff] }
  0x30   :  { %2751 = vmatprep.subr.bf16.mxu0 %v3285_v3  ;;  %v3404_v25 = vpack.c.bf16 %v91_v24, %v90_v23  ;;  %v93_v27 = vld [vmem:[#allocation10 + $0x68] sm:$0xff]  ;;  %v94_v29 = vld [vmem:[#allocation10 + $0x70] sm:$0xff]  ;;  %v95_v30 = vld [vmem:[#allocation10 + $0x78] sm:$0xff] }
  0x31   :  { %v3408_v28 = vpack.c.bf16 %v93_v27, %v92_v26  ;;  %v3412_v31 = vpack.c.bf16 %v95_v30, %v94_v29  ;;  %v3457_v45 = vld [vmem:[%s4045_s2 + $0x8] sm:$0xff]  ;;  %v1880_v53 = vld [vmem:[%s4044_s1 + $0x10] sm:$0xff]  ;;  %v3523_v17 = vld [vmem:[%s4045_s2 + $0x18] sm:$0xff] }
  0x32   :  { %v1875_v52 = vld [vmem:[%s4044_s1 + $0x8] sm:$0xff]  ;;  %v3494_v61 = vld [vmem:[%s4045_s2 + $0x10] sm:$0xff] }
  0x33   :  { %2753 = vmatpush3.bf16.msra.mxu0 %v3384_v13 }
  0x34   :  { %2754 = vmatprep.subr.bf16.mxu0 %v3285_v3 }
  0x37   :  { %2756 = vmatpush3.bf16.msra.mxu0 %v3388_v16 }
  0x38   :  { %2757 = vmatprep.subr.bf16.mxu0 %v3285_v3 }
  0x3b   :  { %2759 = vmatpush3.bf16.msra.mxu0 %v3392_v19 }
  0x3c   :  { %2760 = vmatprep.subr.bf16.mxu0 %v3285_v3 }
  0x3f   :  { %2762 = vmatpush3.bf16.msra.mxu0 %v3400_v22 }
  0x40   :  { %2763 = vmatprep.subr.bf16.mxu0 %v3285_v3 }
  0x43   :  { %2765 = vmatpush3.bf16.msra.mxu0 %v3404_v25 }
  0x44   :  { %2766 = vmatprep.subr.bf16.mxu0 %v3285_v3 }
  0x47   :  { %2768 = vmatpush3.bf16.msra.mxu0 %v3408_v28 }
  0x48   :  { %2769 = vmatprep.subr.bf16.mxu0 %v3285_v3 }
  0x4b   :  { %2771 = vmatpush3.bf16.msra.mxu0 %v3412_v31 }
  0x4c   :  { %2796 = vmatprep.subr.bf16.mxu0 %v3285_v3 }
  0xac   :  { %v3460_v47 = vpop.permute.xlu1 %215 }
  0xb8   :  { %v133_v32 = vpop.xlane.xlu0 %132 }
  0xb9   :  { %v134_v33 = vsub.f32 0.0, %v133_v32 }
  0xbb   :  { %v135_v34 = vmul.f32 1.442695, %v134_v33 }
  0xbc   :  { %v363_v36 = vpop.xlane.xlu0 %362 }
  0xbd   :  { %3149 = vpow2.f32 %v135_v34  ;;  %v364_v37 = vsub.f32 %v3378_v7, %v363_v36  ;;  %v438_v46 = vadd.f32 %v3457_v45, %v363_v36 }
  0xbf   :  { %v365_v38 = vmul.f32 1.442695, %v364_v37  ;;  %v439_v50 = vadd.f32 %v438_v46, %v3460_v47  ;;  %v64_v46 = vld [vmem:[#allocation7] sm:$0xff] }
  0xc1   :  { %3151 = vpow2.f32 %v365_v38 }
  0xc7   :  { %v3150_v35 = vpop.eup %3149 }
  0xc8   :  { %2221 = vmatmul.mubr.f32.vlgmr.msra.gmra.mrb[0].mxu0 %v3150_v35  ;;  %v3552_v35 = vld [vmem:[%s4045_s2 + $0x20] sm:$0xff] }
  0xc9   :  { %2798 = vmatpush3.bf16.msra.mxu0 %v3380_v11  ;;  %2290 = vmatprep.mubr.msk.f32.mxu0 %vm3286_vm0, %v3283_v1 }
  0xca   :  { %2799 = vmatprep.subr.bf16.mxu0 %v3285_v3 }
  0xcb   :  { %v3152_v39 = vpop.eup %3151 }
  0xcd   :  { %2801 = vmatpush3.bf16.msra.mxu0 %v3384_v13 }
  0xce   :  { %2802 = vmatprep.subr.bf16.mxu0 %v3285_v3 }
  0xd1   :  { %2804 = vmatpush3.bf16.msra.mxu0 %v3388_v16 }
  0xd2   :  { %2805 = vmatprep.subr.bf16.mxu0 %v3285_v3 }
  0xd5   :  { %2807 = vmatpush3.bf16.msra.mxu0 %v3392_v19 }
  0xd6   :  { %2808 = vmatprep.subr.bf16.mxu0 %v3285_v3 }
  0xd9   :  { %2810 = vmatpush3.bf16.msra.mxu0 %v3400_v22 }
  0xda   :  { %2811 = vmatprep.subr.bf16.mxu0 %v3285_v3 }
  0xdd   :  { %2813 = vmatpush3.bf16.msra.mxu0 %v3404_v25 }
  0xde   :  { %2814 = vmatprep.subr.bf16.mxu0 %v3285_v3 }
  0xe1   :  { %2816 = vmatpush3.bf16.msra.mxu0 %v3408_v28 }
  0xe2   :  { %2817 = vmatprep.subr.bf16.mxu0 %v3285_v3 }
  0xe5   :  { %2819 = vmatpush3.bf16.msra.mxu0 %v3412_v31 }
  0xe6   :  { %2844 = vmatprep.subr.bf16.mxu0 %v3285_v3 }
  0xe8   :  { %2291 = vmatmul.mubr.f32.vlgmr.msra.gmra.mrb[2].mxu0 %v3152_v39 }
  0xe9   :  { %2846 = vmatpush3.bf16.msra.mxu0 %v3380_v11  ;;  %2360 = vmatprep.mubr.msk.f32.mxu0 %vm3286_vm0, %v3283_v1 }
  0xea   :  { %2847 = vmatprep.subr.bf16.mxu0 %v3285_v3 }
  0xed   :  { %2849 = vmatpush3.bf16.msra.mxu0 %v3384_v13 }
  0xee   :  { %2850 = vmatprep.subr.bf16.mxu0 %v3285_v3 }
  0xf1   :  { %2852 = vmatpush3.bf16.msra.mxu0 %v3388_v16 }
  0xf2   :  { %2853 = vmatprep.subr.bf16.mxu0 %v3285_v3 }
  0xf5   :  { %2855 = vmatpush3.bf16.msra.mxu0 %v3392_v19 }
  0xf6   :  { %2856 = vmatprep.subr.bf16.mxu0 %v3285_v3 }
  0xf9   :  { %2858 = vmatpush3.bf16.msra.mxu0 %v3400_v22 }
  0xfa   :  { %2859 = vmatprep.subr.bf16.mxu0 %v3285_v3 }
  0xfd   :  { %2861 = vmatpush3.bf16.msra.mxu0 %v3404_v25 }
  0xfe   :  { %2862 = vmatprep.subr.bf16.mxu0 %v3285_v3 }
 0x101   :  { %2864 = vmatpush3.bf16.msra.mxu0 %v3408_v28 }
 0x102   :  { %2865 = vmatprep.subr.bf16.mxu0 %v3285_v3 }
 0x105   :  { %2867 = vmatpush3.bf16.msra.mxu0 %v3412_v31 }
 0x106   :  { %2892 = vmatprep.subr.bf16.mxu0 %v3285_v3 }
 0x19b   :  { %v203_v40 = vpop.f32.mrb[0].mxu0 }
 0x19c   :  { %v2222_v41 = vpop.f32.mrb[1].mxu0 }
 0x1bb   :  { %v433_v42 = vpop.f32.mrb[2].mxu0 }
 0x1bc   :  { %v437_v43 = vmax.f32 %v433_v42, 1e-37  ;;  %v2292_v44 = vpop.f32.mrb[3].mxu0 }
 0x1be   :  { %3153 = vlog2.f32 %v437_v43 }
 0x1c8   :  { %v3154_v48 = vpop.eup %3153 }
 0x1c9   :  { %v441_v49 = vmul.f32 0.6931472, %v3154_v48  ;;  %v65_v48 = vld [vmem:[#allocation7 + $0x8] sm:$0xff] }
 0x1cb   :  { %v3463_v51 = vadd.f32 %v441_v49, %v439_v50  ;;  %v66_v49 = vld [vmem:[#allocation7 + $0x10] sm:$0xff]  ;;  %v3581_v50 = vpack.c.bf16 %v65_v48, %v64_v46 }
 0x1cd   :  { %570 = vmax.xlane.f32.xlu1 %v3463_v51  ;;  %2774 = vmatpush3.bf16.msra.mxu1 %v3581_v50 }
 0x1ce   :  { %2775 = vmatprep.subr.bf16.mxu1 %v3285_v3 }
 0x1de   :  { %346 = vperm.xlu1 %3147, %v1875_v52   ;;  %v67_v52 = vld [vmem:[#allocation7 + $0x18] sm:$0xff] }
 0x1e2   :  { %554 = vperm.xlu1 %3147, %v1880_v53   ;;  %v3584_v53 = vpack.c.bf16 %v67_v52, %v66_v49 }
 0x1e4   :  { %2777 = vmatpush3.bf16.msra.mxu1 %v3584_v53 }
 0x1e5   :  { %2778 = vmatprep.subr.bf16.mxu1 %v3285_v3 }
 0x25a   :  { %v571_v54 = vpop.xlane.xlu1 %570 }
 0x25b   :  { %v572_v55 = vsub.f32 %v3463_v51, %v571_v54  ;;  %v646_v62 = vadd.f32 %v3494_v61, %v571_v54  ;;  %v68_v54 = vld [vmem:[#allocation7 + $0x20] sm:$0xff] }
 0x25d   :  { %v573_v56 = vmul.f32 1.442695, %v572_v55  ;;  %v647_v0 = vadd.f32 %v646_v62, %v3460_v47  ;;  %v69_v55 = vld [vmem:[#allocation7 + $0x28] sm:$0xff] }
 0x25e   :  { %v73_v62 = vld [vmem:[#allocation7 + $0x48] sm:$0xff]  ;;  %v347_v49 = vpop.permute.xlu1 %346 }
 0x25f   :  { %3155 = vpow2.f32 %v573_v56  ;;  %v3588_v56 = vpack.c.bf16 %v69_v55, %v68_v54  ;;  %v3287_v55 = vmov 1.0  }
 0x261   :  { %2780 = vmatpush3.bf16.msra.mxu1 %v3588_v56 }
 0x262   :  { %2781 = vmatprep.subr.bf16.mxu1 %v3285_v3 }
 0x269   :  { %v3156_v57 = vpop.eup %3155 }
 0x26a   :  { %2361 = vmatmul.mubr.f32.vlgmr.msra.gmra.mrb[4].mxu0 %v3156_v57  ;;  %v70_v57 = vld [vmem:[#allocation7 + $0x30] sm:$0xff] }
 0x26b   :  { %2894 = vmatpush3.bf16.msra.mxu0 %v3380_v11  ;;  %2430 = vmatprep.mubr.msk.f32.mxu0 %vm3286_vm0, %v3283_v1 }
 0x26c   :  { %2895 = vmatprep.subr.bf16.mxu0 %v3285_v3 }
 0x26f   :  { %2897 = vmatpush3.bf16.msra.mxu0 %v3384_v13 }
 0x270   :  { %2898 = vmatprep.subr.bf16.mxu0 %v3285_v3 }
 0x273   :  { %2900 = vmatpush3.bf16.msra.mxu0 %v3388_v16 }
 0x274   :  { %2901 = vmatprep.subr.bf16.mxu0 %v3285_v3 }
 0x277   :  { %2903 = vmatpush3.bf16.msra.mxu0 %v3392_v19 }
 0x278   :  { %2904 = vmatprep.subr.bf16.mxu0 %v3285_v3 }
 0x27b   :  { %2906 = vmatpush3.bf16.msra.mxu0 %v3400_v22 }
 0x27c   :  { %2907 = vmatprep.subr.bf16.mxu0 %v3285_v3 }
 0x27f   :  { %2909 = vmatpush3.bf16.msra.mxu0 %v3404_v25 }
 0x280   :  { %2910 = vmatprep.subr.bf16.mxu0 %v3285_v3 }
 0x283   :  { %2912 = vmatpush3.bf16.msra.mxu0 %v3408_v28 }
 0x284   :  { %2913 = vmatprep.subr.bf16.mxu0 %v3285_v3 }
 0x287   :  { %2915 = vmatpush3.bf16.msra.mxu0 %v3412_v31 }
 0x288   :  { %2940 = vmatprep.subr.bf16.mxu0 %v3285_v3 }
 0x33d   :  { %v641_v58 = vpop.f32.mrb[4].mxu0 }
 0x33e   :  { %v645_v59 = vmax.f32 %v641_v58, 1e-37  ;;  %v2362_v60 = vpop.f32.mrb[5].mxu0  ;;  %v71_v58 = vld [vmem:[#allocation7 + $0x38] sm:$0xff] }
 0x33f   :  { %v72_v60 = vld [vmem:[#allocation7 + $0x40] sm:$0xff] }
 0x340   :  { %3157 = vlog2.f32 %v645_v59  ;;  %v3592_v59 = vpack.c.bf16 %v71_v58, %v70_v57 }
 0x342   :  { %2783 = vmatpush3.bf16.msra.mxu1 %v3592_v59 }
 0x343   :  { %2784 = vmatprep.subr.bf16.mxu1 %v3285_v3 }
 0x34a   :  { %v3158_v63 = vpop.eup %3157 }
 0x34b   :  { %v649_v4 = vmul.f32 0.6931472, %v3158_v63  ;;  %v3596_v63 = vpack.c.bf16 %v73_v62, %v72_v60  ;;  %v3684_v60 = vld [vmem:[%s4049_s6] ss:$0 sm:$0xff] }
 0x34d   :  { %v3498_v5 = vadd.f32 %v649_v4, %v647_v0  ;;  %v74_v0 = vld [vmem:[#allocation7 + $0x50] sm:$0xff]  ;;  %v75_v4 = vld [vmem:[#allocation7 + $0x58] sm:$0xff]  ;;  %2786 = vmatpush3.bf16.msra.mxu1 %v3596_v63 }
 0x34e   :  { %2787 = vmatprep.subr.bf16.mxu1 %v3285_v3 }
 0x34f   :  { %778 = vmax.xlane.f32.xlu0 %v3498_v5 }
 0x3dc   :  { %v779_v6 = vpop.xlane.xlu0 %778 }
 0x3dd   :  { %v780_v8 = vsub.f32 %v3498_v5, %v779_v6  ;;  %v854_v18 = vadd.f32 %v3523_v17, %v779_v6  ;;  %v3600_v6 = vpack.c.bf16 %v75_v4, %v74_v0 }
 0x3df   :  { %v781_v9 = vmul.f32 1.442695, %v780_v8  ;;  %v855_v21 = vadd.f32 %v854_v18, %v3460_v47  ;;  %v76_v8 = vld [vmem:[#allocation7 + $0x60] sm:$0xff]  ;;  %2789 = vmatpush3.bf16.msra.mxu1 %v3600_v6 }
 0x3e0   :  { %2790 = vmatprep.subr.bf16.mxu1 %v3285_v3 }
 0x3e1   :  { %3159 = vpow2.f32 %v781_v9  ;;  %v77_v9 = vld [vmem:[#allocation7 + $0x68] sm:$0xff] }
 0x3eb   :  { %v3160_v10 = vpop.eup %3159 }
 0x3ec   :  { %2431 = vmatmul.mubr.f32.vlgmr.msra.gmra.mrb[6].mxu0 %v3160_v10  ;;  %v3604_v10 = vpack.c.bf16 %v77_v9, %v76_v8 }
 0x3ed   :  { %2942 = vmatpush3.bf16.msra.mxu0 %v3380_v11  ;;  %2500 = vmatprep.mubr.msk.f32.mxu0 %vm3286_vm0, %v3283_v1 }
 0x3ee   :  { %2943 = vmatprep.subr.bf16.mxu0 %v3285_v3  ;;  %2792 = vmatpush3.bf16.msra.mxu1 %v3604_v10 }
 0x3ef   :  { %2793 = vmatprep.subr.bf16.mxu1 %v3285_v3 }
 0x3f1   :  { %2945 = vmatpush3.bf16.msra.mxu0 %v3384_v13 }
 0x3f2   :  { %2946 = vmatprep.subr.bf16.mxu0 %v3285_v3 }
 0x3f5   :  { %2948 = vmatpush3.bf16.msra.mxu0 %v3388_v16 }
 0x3f6   :  { %2949 = vmatprep.subr.bf16.mxu0 %v3285_v3 }
 0x3f9   :  { %2951 = vmatpush3.bf16.msra.mxu0 %v3392_v19 }
 0x3fa   :  { %2952 = vmatprep.subr.bf16.mxu0 %v3285_v3 }
 0x3fd   :  { %2954 = vmatpush3.bf16.msra.mxu0 %v3400_v22 }
 0x3fe   :  { %2955 = vmatprep.subr.bf16.mxu0 %v3285_v3 }
 0x401   :  { %2957 = vmatpush3.bf16.msra.mxu0 %v3404_v25 }
 0x402   :  { %2958 = vmatprep.subr.bf16.mxu0 %v3285_v3 }
 0x405   :  { %2960 = vmatpush3.bf16.msra.mxu0 %v3408_v28 }
 0x406   :  { %2961 = vmatprep.subr.bf16.mxu0 %v3285_v3 }
 0x409   :  { %2963 = vmatpush3.bf16.msra.mxu0 %v3412_v31 }
 0x40a   :  { %2988 = vmatprep.subr.bf16.mxu0 %v3285_v3 }
 0x4bf   :  { %v849_v12 = vpop.f32.mrb[6].mxu0 }
 0x4c0   :  { %v853_v14 = vmax.f32 %v849_v12, 1e-37  ;;  %v2432_v15 = vpop.f32.mrb[7].mxu0  ;;  %v78_v12 = vld [vmem:[#allocation7 + $0x70] sm:$0xff] }
 0x4c2   :  { %3161 = vlog2.f32 %v853_v14  ;;  %v79_v14 = vld [vmem:[#allocation7 + $0x78] sm:$0xff] }
 0x4c3   :  { %v3608_v15 = vpack.c.bf16 %v79_v14, %v78_v12 }
 0x4c5   :  { %2795 = vmatpush3.bf16.msra.mxu1 %v3608_v15 }
 0x4c6   :  { %2820 = vmatprep.subr.bf16.mxu1 %v3285_v3 }
 0x4c8   :  { %2256 = vmatmul.mubr.f32.vlgmr.msra.gmra.mrb[0].mxu1 %v3283_v1 }
 0x4c9   :  { %2822 = vmatpush3.bf16.msra.mxu1 %v3581_v50  ;;  %2325 = vmatprep.mubr.msk.f32.mxu1 %vm3286_vm0, %v3283_v1 }
 0x4ca   :  { %2823 = vmatprep.subr.bf16.mxu1 %v3285_v3 }
 0x4cc   :  { %v3162_v20 = vpop.eup %3161 }
 0x4cd   :  { %v857_v23 = vmul.f32 0.6931472, %v3162_v20  ;;  %2825 = vmatpush3.bf16.msra.mxu1 %v3584_v53 }
 0x4ce   :  { %2826 = vmatprep.subr.bf16.mxu1 %v3285_v3 }
 0x4cf   :  { %v3527_v24 = vadd.f32 %v857_v23, %v855_v21  ;;  %v3635_v23 = vld [vmem:[%s4045_s2 + $0x28] sm:$0xff] }
 0x4d1   :  { %986 = vmax.xlane.f32.xlu0 %v3527_v24  ;;  %2828 = vmatpush3.bf16.msra.mxu1 %v3588_v56 }
 0x4d2   :  { %2829 = vmatprep.subr.bf16.mxu1 %v3285_v3 }
 0x4d5   :  { %2831 = vmatpush3.bf16.msra.mxu1 %v3592_v59 }
 0x4d6   :  { %2832 = vmatprep.subr.bf16.mxu1 %v3285_v3 }
 0x4d9   :  { %2834 = vmatpush3.bf16.msra.mxu1 %v3596_v63 }
 0x4da   :  { %2835 = vmatprep.subr.bf16.mxu1 %v3285_v3 }
 0x4dd   :  { %2837 = vmatpush3.bf16.msra.mxu1 %v3600_v6 }
 0x4de   :  { %2838 = vmatprep.subr.bf16.mxu1 %v3285_v3 }
 0x4e1   :  { %2840 = vmatpush3.bf16.msra.mxu1 %v3604_v10 }
 0x4e2   :  { %2841 = vmatprep.subr.bf16.mxu1 %v3285_v3 }
 0x4e5   :  { %2843 = vmatpush3.bf16.msra.mxu1 %v3608_v15 }
 0x4e6   :  { %2868 = vmatprep.subr.bf16.mxu1 %v3285_v3 }
 0x55e   :  { %v987_v26 = vpop.xlane.xlu0 %986 }
 0x55f   :  { %v988_v27 = vsub.f32 %v3527_v24, %v987_v26  ;;  %v1062_v36 = vadd.f32 %v3552_v35, %v987_v26 }
 0x561   :  { %v989_v29 = vmul.f32 1.442695, %v988_v27  ;;  %v1063_v38 = vadd.f32 %v1062_v36, %v3460_v47  ;;  %v1890_v36 = vld [vmem:[%s4044_s1 + $0x20] sm:$0xff] }
 0x563   :  { %3163 = vpow2.f32 %v989_v29 }
 0x56d   :  { %v3164_v30 = vpop.eup %3163 }
 0x56e   :  { %2501 = vmatmul.mubr.f32.vlgmr.msra.gmra.mrb[8].mxu0 %v3164_v30 }
 0x56f   :  { %2990 = vmatpush3.bf16.msra.mxu0 %v3380_v11  ;;  %2570 = vmatprep.mubr.msk.f32.mxu0 %vm3286_vm0, %v3283_v1 }
 0x570   :  { %2991 = vmatprep.subr.bf16.mxu0 %v3285_v3 }
 0x573   :  { %2993 = vmatpush3.bf16.msra.mxu0 %v3384_v13 }
 0x574   :  { %2994 = vmatprep.subr.bf16.mxu0 %v3285_v3 }
 0x577   :  { %2996 = vmatpush3.bf16.msra.mxu0 %v3388_v16 }
 0x578   :  { %2997 = vmatprep.subr.bf16.mxu0 %v3285_v3 }
 0x57b   :  { %2999 = vmatpush3.bf16.msra.mxu0 %v3392_v19 }
 0x57c   :  { %3000 = vmatprep.subr.bf16.mxu0 %v3285_v3 }
 0x57f   :  { %3002 = vmatpush3.bf16.msra.mxu0 %v3400_v22 }
 0x580   :  { %3003 = vmatprep.subr.bf16.mxu0 %v3285_v3 }
 0x583   :  { %3005 = vmatpush3.bf16.msra.mxu0 %v3404_v25 }
 0x584   :  { %3006 = vmatprep.subr.bf16.mxu0 %v3285_v3 }
 0x587   :  { %3008 = vmatpush3.bf16.msra.mxu0 %v3408_v28 }
 0x588   :  { %3009 = vmatprep.subr.bf16.mxu0 %v3285_v3 }
 0x58b   :  { %3011 = vmatpush3.bf16.msra.mxu0 %v3412_v31 }
 0x58c   :  { %3036 = vmatprep.subr.bf16.mxu0 %v3285_v3 }
 0x641   :  { %v1057_v32 = vpop.f32.mrb[8].mxu0 }
 0x642   :  { %v1061_v33 = vmax.f32 %v1057_v32, 1e-37  ;;  %v2502_v34 = vpop.f32.mrb[9].mxu0 }
 0x643   :  { %v1885_v34 = vld [vmem:[%s4044_s1 + $0x18] sm:$0xff] }
 0x644   :  { %3165 = vlog2.f32 %v1061_v33  ;;  %v113_v33 = vld [vmem:[%s4044_s1] sm:$0xff] }
 0x64e   :  { %v3166_v37 = vpop.eup %3165 }
 0x64f   :  { %v1065_v39 = vmul.f32 0.6931472, %v3166_v37  ;;  %v1895_v37 = vld [vmem:[%s4044_s1 + $0x28] sm:$0xff] }
 0x651   :  { %v3556_v40 = vadd.f32 %v1065_v39, %v1063_v38  ;;  %v1900_v38 = vld [vmem:[%s4044_s1 + $0x30] sm:$0xff]  ;;  %v313_v39 = vpop.f32.mrb[0].mxu1 }
 0x653   :  { %1194 = vmax.xlane.f32.xlu0 %v3556_v40 }
 0x6e0   :  { %v3559_v41 = vpop.xlane.xlu0 %1194 }
 0x6e1   :  { %v1196_v42 = vsub.f32 %v3556_v40, %v3559_v41  ;;  %v1270_v26 = vadd.f32 %v3635_v23, %v3559_v41  ;;  %v2257_v41 = vpop.f32.mrb[1].mxu1 }
 0x6e3   :  { %v1197_v43 = vmul.f32 1.442695, %v1196_v42  ;;  %v1271_v29 = vadd.f32 %v1270_v26, %v3460_v47 }
 0x6e5   :  { %3167 = vpow2.f32 %v1197_v43  ;;  %v99_v43 = vlaneseq }
 0x6e7   :  { %v3662_v48 = vand.u32 127, %v99_v43 }
 0x6e9   :  { %vm348_vm1 = vcmp.eq.s32.totalorder %v3662_v48, %v347_v49 }
 0x6ea   :  { %v3678_v58 = vsel %vm348_vm1, 1.0, %v3283_v1 }
 0x6eb   :  { %v536_v0 = vmul.f32 %v3678_v58, %v3684_v60 }
 0x6ef   :  { %v3168_v44 = vpop.eup %3167 }
 0x6f0   :  { %2571 = vmatmul.mubr.f32.vlgmr.msra.gmra.mrb[10].mxu0 %v3168_v44 }
 0x6f1   :  { %3038 = vmatpush3.bf16.msra.mxu0 %v3380_v11  ;;  %2640 = vmatprep.mubr.msk.f32.mxu0 %vm3286_vm0, %v3283_v1 }
 0x6f2   :  { %3039 = vmatprep.subr.bf16.mxu0 %v3285_v3 }
 0x6f5   :  { %3041 = vmatpush3.bf16.msra.mxu0 %v3384_v13 }
 0x6f6   :  { %3042 = vmatprep.subr.bf16.mxu0 %v3285_v3 }
 0x6f9   :  { %3044 = vmatpush3.bf16.msra.mxu0 %v3388_v16 }
 0x6fa   :  { %3045 = vmatprep.subr.bf16.mxu0 %v3285_v3 }
 0x6fd   :  { %3047 = vmatpush3.bf16.msra.mxu0 %v3392_v19 }
 0x6fe   :  { %3048 = vmatprep.subr.bf16.mxu0 %v3285_v3 }
 0x701   :  { %3050 = vmatpush3.bf16.msra.mxu0 %v3400_v22 }
 0x702   :  { %3051 = vmatprep.subr.bf16.mxu0 %v3285_v3 }
 0x705   :  { %3053 = vmatpush3.bf16.msra.mxu0 %v3404_v25 }
 0x706   :  { %3054 = vmatprep.subr.bf16.mxu0 %v3285_v3 }
 0x709   :  { %3056 = vmatpush3.bf16.msra.mxu0 %v3408_v28 }
 0x70a   :  { %3057 = vmatprep.subr.bf16.mxu0 %v3285_v3 }
 0x70d   :  { %3059 = vmatpush3.bf16.msra.mxu0 %v3412_v31 }
 0x70e   :  { %3084 = vmatprep.subr.bf16.mxu0 %v3285_v3 }
 0x7c3   :  { %v1265_v18 = vpop.f32.mrb[10].mxu0 }
 0x7c4   :  { %v1269_v20 = vmax.f32 %v1265_v18, 1e-37  ;;  %v2572_v21 = vpop.f32.mrb[11].mxu0 }
 0x7c6   :  { %3169 = vlog2.f32 %v1269_v20 }
 0x7d0   :  { %v3170_v27 = vpop.eup %3169 }
 0x7d1   :  { %v1273_v30 = vmul.f32 0.6931472, %v3170_v27 }
 0x7d3   :  { %v3640_v32 = vadd.f32 %v1273_v30, %v1271_v29 }
 0x7d5   :  { %1402 = vmax.xlane.f32.xlu0 %v3640_v32 }
 0x7eb   :  { %115 = vperm.xlu0 %3148, %v113_v33  }
 0x7ef   :  { %762 = vperm.xlu0 %3148, %v1885_v34  }
 0x7f3   :  { %970 = vperm.xlu0 %3148, %v1890_v36  }
 0x7f7   :  { %1178 = vperm.xlu0 %3148, %v1895_v37  }
 0x7fb   :  { %1386 = vperm.xlu0 %3148, %v1900_v38  }
 0x862   :  { %v3658_v42 = vpop.xlane.xlu0 %1402 }
 0x863   :  { %v1404_v44 = vsub.f32 %v3640_v32, %v3658_v42 }
 0x865   :  { %v1405_v46 = vmul.f32 1.442695, %v1404_v44 }
 0x867   :  { %3171 = vpow2.f32 %v1405_v46 }
 0x86a   :  { %v116_v52 = vpop.permute.xlu0 %115 }
 0x86b   :  { %vm117_vm2 = vcmp.eq.s32.totalorder %v3662_v48, %v116_v52 }
 0x86c   :  { %v3667_v54 = vsel %vm117_vm2, 1.0, %v3283_v1  ;;  %2326 = vmatmul.mubr.msk.f32.vlgmr.msra.gmra.mrb[2].mxu1 %vm117_vm2, %v3287_v55 }
 0x86d   :  { %2870 = vmatpush3.bf16.msra.mxu1 %v3581_v50  ;;  %v243_v57 = vmul.f32 %v3667_v54, %v3378_v7  ;;  %2395 = vmatprep.mubr.msk.f32.mxu1 %vm3286_vm0, %v3283_v1  ;;  %v327_v9 = vmul.f32 %v3684_v60, %v3667_v54 }
 0x86e   :  { %2871 = vmatprep.subr.bf16.mxu1 %v3285_v3 }
 0x86f   :  { %244 = vadd.xlane.f32.xlu0 %v243_v57 }
 0x871   :  { %v3172_v62 = vpop.eup %3171  ;;  %2873 = vmatpush3.bf16.msra.mxu1 %v3584_v53 }
 0x872   :  { %2641 = vmatmul.mubr.f32.vlgmr.msra.gmra.mrb[12].mxu0 %v3172_v62  ;;  %2874 = vmatprep.subr.bf16.mxu1 %v3285_v3 }
 0x873   :  { %537 = vadd.xlane.f32.xlu0 %v536_v0  ;;  %3086 = vmatpush3.bf16.msra.mxu0 %v3380_v11  ;;  %v3738_v11 = vpop.permute.xlu1 %554 }
 0x874   :  { %3087 = vmatprep.subr.bf16.mxu0 %v3285_v3  ;;  %2710 = vmatprep.mubr.msk.f32.mxu0 %vm3286_vm0, %v3283_v1  ;;  %vm556_vm3 = vcmp.eq.s32.totalorder %v3662_v48, %v3738_v11 }
 0x875   :  { %2876 = vmatpush3.bf16.msra.mxu1 %v3588_v56  ;;  %v1881_v12 = vsel %vm556_vm3, 1.0, %v3283_v1 }
 0x876   :  { %2877 = vmatprep.subr.bf16.mxu1 %v3285_v3  ;;  %v744_v20 = vmul.f32 %v1881_v12, %v3684_v60 }
 0x877   :  { %3089 = vmatpush3.bf16.msra.mxu0 %v3384_v13  ;;  %v3764_v13 = vpop.permute.xlu0 %762 }
 0x878   :  { %3090 = vmatprep.subr.bf16.mxu0 %v3285_v3  ;;  %vm764_vm4 = vcmp.eq.s32.totalorder %v3662_v48, %v3764_v13 }
 0x879   :  { %2879 = vmatpush3.bf16.msra.mxu1 %v3592_v59  ;;  %v1886_v41 = vsel %vm764_vm4, 1.0, %v3283_v1 }
 0x87a   :  { %2880 = vmatprep.subr.bf16.mxu1 %v3285_v3  ;;  %v952_v43 = vmul.f32 %v1886_v41, %v3684_v60 }
 0x87b   :  { %3092 = vmatpush3.bf16.msra.mxu0 %v3388_v16  ;;  %v3790_v16 = vpop.permute.xlu0 %970 }
 0x87c   :  { %3093 = vmatprep.subr.bf16.mxu0 %v3285_v3  ;;  %vm972_vm5 = vcmp.eq.s32.totalorder %v3662_v48, %v3790_v16 }
 0x87d   :  { %2882 = vmatpush3.bf16.msra.mxu1 %v3596_v63 }
 0x87e   :  { %2883 = vmatprep.subr.bf16.mxu1 %v3285_v3 }
 0x87f   :  { %3095 = vmatpush3.bf16.msra.mxu0 %v3392_v19  ;;  %v3816_v19 = vpop.permute.xlu0 %1178 }
 0x880   :  { %3096 = vmatprep.subr.bf16.mxu0 %v3285_v3  ;;  %vm1180_vm6 = vcmp.eq.s32.totalorder %v3662_v48, %v3816_v19 }
 0x881   :  { %2885 = vmatpush3.bf16.msra.mxu1 %v3600_v6  ;;  %v1896_v57 = vsel %vm1180_vm6, 1.0, %v3283_v1 }
 0x882   :  { %2886 = vmatprep.subr.bf16.mxu1 %v3285_v3 }
 0x883   :  { %3098 = vmatpush3.bf16.msra.mxu0 %v3400_v22  ;;  %v3842_v22 = vpop.permute.xlu0 %1386 }
 0x884   :  { %3099 = vmatprep.subr.bf16.mxu0 %v3285_v3  ;;  %vm1388_vm7 = vcmp.eq.s32.totalorder %v3662_v48, %v3842_v22 }
 0x885   :  { %2888 = vmatpush3.bf16.msra.mxu1 %v3604_v10 }
 0x886   :  { %2889 = vmatprep.subr.bf16.mxu1 %v3285_v3 }
 0x887   :  { %3101 = vmatpush3.bf16.msra.mxu0 %v3404_v25 }
 0x888   :  { %3102 = vmatprep.subr.bf16.mxu0 %v3285_v3 }
 0x889   :  { %2891 = vmatpush3.bf16.msra.mxu1 %v3608_v15 }
 0x88a   :  { %2916 = vmatprep.subr.bf16.mxu1 %v3285_v3 }
 0x88b   :  { %3104 = vmatpush3.bf16.msra.mxu0 %v3408_v28 }
 0x88c   :  { %2396 = vmatmul.mubr.msk.f32.vlgmr.msra.gmra.mrb[4].mxu1 %vm348_vm1, %v3287_v55  ;;  %3105 = vmatprep.subr.bf16.mxu0 %v3285_v3 }
 0x88d   :  { %2918 = vmatpush3.bf16.msra.mxu1 %v3581_v50  ;;  %2465 = vmatprep.mubr.msk.f32.mxu1 %vm3286_vm0, %v3283_v1 }
 0x88e   :  { %2919 = vmatprep.subr.bf16.mxu1 %v3285_v3 }
 0x88f   :  { %3107 = vmatpush3.bf16.msra.mxu0 %v3412_v31 }
 0x891   :  { %2921 = vmatpush3.bf16.msra.mxu1 %v3584_v53 }
 0x892   :  { %2922 = vmatprep.subr.bf16.mxu1 %v3285_v3 }
 0x895   :  { %2924 = vmatpush3.bf16.msra.mxu1 %v3588_v56 }
 0x896   :  { %2925 = vmatprep.subr.bf16.mxu1 %v3285_v3 }
 0x899   :  { %2927 = vmatpush3.bf16.msra.mxu1 %v3592_v59 }
 0x89a   :  { %2928 = vmatprep.subr.bf16.mxu1 %v3285_v3 }
 0x89d   :  { %2930 = vmatpush3.bf16.msra.mxu1 %v3596_v63 }
 0x89e   :  { %2931 = vmatprep.subr.bf16.mxu1 %v3285_v3 }
 0x8a1   :  { %2933 = vmatpush3.bf16.msra.mxu1 %v3600_v6 }
 0x8a2   :  { %2934 = vmatprep.subr.bf16.mxu1 %v3285_v3 }
 0x8a5   :  { %2936 = vmatpush3.bf16.msra.mxu1 %v3604_v10 }
 0x8a6   :  { %2937 = vmatprep.subr.bf16.mxu1 %v3285_v3 }
 0x8a9   :  { %2939 = vmatpush3.bf16.msra.mxu1 %v3608_v15 }
 0x8aa   :  { %2964 = vmatprep.subr.bf16.mxu1 %v3285_v3 }
 0x8ac   :  { %2466 = vmatmul.mubr.msk.f32.vlgmr.msra.gmra.mrb[6].mxu1 %vm556_vm3, %v3287_v55 }
 0x8ad   :  { %2966 = vmatpush3.bf16.msra.mxu1 %v3581_v50  ;;  %2535 = vmatprep.mubr.msk.f32.mxu1 %vm3286_vm0, %v3283_v1 }
 0x8ae   :  { %2967 = vmatprep.subr.bf16.mxu1 %v3285_v3 }
 0x8b1   :  { %2969 = vmatpush3.bf16.msra.mxu1 %v3584_v53 }
 0x8b2   :  { %2970 = vmatprep.subr.bf16.mxu1 %v3285_v3 }
 0x8b5   :  { %2972 = vmatpush3.bf16.msra.mxu1 %v3588_v56 }
 0x8b6   :  { %2973 = vmatprep.subr.bf16.mxu1 %v3285_v3 }
 0x8b9   :  { %2975 = vmatpush3.bf16.msra.mxu1 %v3592_v59 }
 0x8ba   :  { %2976 = vmatprep.subr.bf16.mxu1 %v3285_v3 }
 0x8bd   :  { %2978 = vmatpush3.bf16.msra.mxu1 %v3596_v63 }
 0x8be   :  { %2979 = vmatprep.subr.bf16.mxu1 %v3285_v3 }
 0x8c1   :  { %2981 = vmatpush3.bf16.msra.mxu1 %v3600_v6 }
 0x8c2   :  { %2982 = vmatprep.subr.bf16.mxu1 %v3285_v3 }
 0x8c5   :  { %2984 = vmatpush3.bf16.msra.mxu1 %v3604_v10 }
 0x8c6   :  { %2985 = vmatprep.subr.bf16.mxu1 %v3285_v3 }
 0x8c9   :  { %2987 = vmatpush3.bf16.msra.mxu1 %v3608_v15 }
 0x8ca   :  { %3012 = vmatprep.subr.bf16.mxu1 %v3285_v3 }
 0x8cc   :  { %2536 = vmatmul.mubr.msk.f32.vlgmr.msra.gmra.mrb[8].mxu1 %vm764_vm4, %v3287_v55 }
 0x8cd   :  { %3014 = vmatpush3.bf16.msra.mxu1 %v3581_v50  ;;  %2605 = vmatprep.mubr.msk.f32.mxu1 %vm3286_vm0, %v3283_v1 }
 0x8ce   :  { %3015 = vmatprep.subr.bf16.mxu1 %v3285_v3 }
 0x8d1   :  { %3017 = vmatpush3.bf16.msra.mxu1 %v3584_v53 }
 0x8d2   :  { %3018 = vmatprep.subr.bf16.mxu1 %v3285_v3 }
 0x8d5   :  { %3020 = vmatpush3.bf16.msra.mxu1 %v3588_v56 }
 0x8d6   :  { %3021 = vmatprep.subr.bf16.mxu1 %v3285_v3 }
 0x8d9   :  { %3023 = vmatpush3.bf16.msra.mxu1 %v3592_v59 }
 0x8da   :  { %3024 = vmatprep.subr.bf16.mxu1 %v3285_v3 }
 0x8dd   :  { %3026 = vmatpush3.bf16.msra.mxu1 %v3596_v63 }
 0x8de   :  { %3027 = vmatprep.subr.bf16.mxu1 %v3285_v3 }
 0x8e1   :  { %3029 = vmatpush3.bf16.msra.mxu1 %v3600_v6 }
 0x8e2   :  { %3030 = vmatprep.subr.bf16.mxu1 %v3285_v3 }
 0x8e5   :  { %3032 = vmatpush3.bf16.msra.mxu1 %v3604_v10 }
 0x8e6   :  { %3033 = vmatprep.subr.bf16.mxu1 %v3285_v3 }
 0x8e9   :  { %3035 = vmatpush3.bf16.msra.mxu1 %v3608_v15 }
 0x8ea   :  { %3060 = vmatprep.subr.bf16.mxu1 %v3285_v3 }
 0x8ec   :  { %2606 = vmatmul.mubr.msk.f32.vlgmr.msra.gmra.mrb[10].mxu1 %vm972_vm5, %v3287_v55 }
 0x8ed   :  { %3062 = vmatpush3.bf16.msra.mxu1 %v3581_v50  ;;  %2675 = vmatprep.mubr.msk.f32.mxu1 %vm3286_vm0, %v3283_v1 }
 0x8ee   :  { %3063 = vmatprep.subr.bf16.mxu1 %v3285_v3 }
 0x8f1   :  { %3065 = vmatpush3.bf16.msra.mxu1 %v3584_v53 }
 0x8f2   :  { %3066 = vmatprep.subr.bf16.mxu1 %v3285_v3 }
 0x8f5   :  { %3068 = vmatpush3.bf16.msra.mxu1 %v3588_v56 }
 0x8f6   :  { %3069 = vmatprep.subr.bf16.mxu1 %v3285_v3 }
 0x8f9   :  { %3071 = vmatpush3.bf16.msra.mxu1 %v3592_v59 }
 0x8fa   :  { %3072 = vmatprep.subr.bf16.mxu1 %v3285_v3 }
 0x8fd   :  { %3074 = vmatpush3.bf16.msra.mxu1 %v3596_v63 }
 0x8fe   :  { %3075 = vmatprep.subr.bf16.mxu1 %v3285_v3 }
 0x901   :  { %3077 = vmatpush3.bf16.msra.mxu1 %v3600_v6 }
 0x902   :  { %3078 = vmatprep.subr.bf16.mxu1 %v3285_v3 }
 0x905   :  { %3080 = vmatpush3.bf16.msra.mxu1 %v3604_v10 }
 0x906   :  { %3081 = vmatprep.subr.bf16.mxu1 %v3285_v3 }
 0x909   :  { %3083 = vmatpush3.bf16.msra.mxu1 %v3608_v15 }
 0x90a   :  { %3108 = vmatprep.subr.bf16.mxu1 %v3285_v3 }
 0x90c   :  { %2676 = vmatmul.mubr.msk.f32.vlgmr.msra.gmra.mrb[12].mxu1 %vm1180_vm6, %v3287_v55 }
 0x90d   :  { %3110 = vmatpush3.bf16.msra.mxu1 %v3581_v50  ;;  %2745 = vmatprep.mubr.msk.f32.mxu1 %vm3286_vm0, %v3283_v1 }
 0x90e   :  { %3111 = vmatprep.subr.bf16.mxu1 %v3285_v3 }
 0x911   :  { %3113 = vmatpush3.bf16.msra.mxu1 %v3584_v53 }
 0x912   :  { %3114 = vmatprep.subr.bf16.mxu1 %v3285_v3 }
 0x915   :  { %3116 = vmatpush3.bf16.msra.mxu1 %v3588_v56 }
 0x916   :  { %3117 = vmatprep.subr.bf16.mxu1 %v3285_v3 }
 0x919   :  { %3119 = vmatpush3.bf16.msra.mxu1 %v3592_v59 }
 0x91a   :  { %3120 = vmatprep.subr.bf16.mxu1 %v3285_v3 }
 0x91d   :  { %3122 = vmatpush3.bf16.msra.mxu1 %v3596_v63 }
 0x91e   :  { %3123 = vmatprep.subr.bf16.mxu1 %v3285_v3 }
 0x921   :  { %3125 = vmatpush3.bf16.msra.mxu1 %v3600_v6 }
 0x922   :  { %3126 = vmatprep.subr.bf16.mxu1 %v3285_v3 }
 0x925   :  { %3128 = vmatpush3.bf16.msra.mxu1 %v3604_v10 }
 0x926   :  { %3129 = vmatprep.subr.bf16.mxu1 %v3285_v3  ;;  %v3854_v3 = vld [vmem:[%s4045_s2 + $0x30] sm:$0xff] }
 0x927   :  { %v1478_v56 = vadd.f32 %v3854_v3, %v3658_v42 }
 0x929   :  { %3131 = vmatpush3.bf16.msra.mxu1 %v3608_v15  ;;  %v1479_v63 = vadd.f32 %v1478_v56, %v3460_v47 }
 0x92c   :  { %2746 = vmatmul.mubr.msk.f32.vlgmr.msra.gmra.mrb[14].mxu1 %vm1388_vm7, %v3287_v55 }
 0x93f   :  { %v528_v25 = vpop.f32.mrb[2].mxu1 }
 0x940   :  { %v2327_v28 = vpop.f32.mrb[3].mxu1  ;;  %v532_v8 = vadd.f32 %v3457_v45, %v528_v25  ;;  %v3877_v45 = vld [vmem:[%s4043_s0] sm:$0xff] }
 0x941   :  { %v3880_v26 = vadd.s32 4294967295, %v3877_v45  ;;  %vm101_vm1 = vcmp.gt.s32.totalorder %v3877_v45, 0  ;;  %vm1877_vm2 = vcmp.gt.s32.totalorder %v3877_v45, 1  ;;  %vm1882_vm3 = vcmp.gt.s32.totalorder %v3877_v45, 2 }
 0x942   :  { %v533_v10 = vmul.f32 %v3678_v58, %v532_v8 }
 0x943   :  { %vm352_vm9 = vcmp.eq.s32.totalorder %v3880_v26, 1  ;;  %vm768_vm10 = vcmp.eq.s32.totalorder %v3880_v26, 3  ;;  %vm122_vm11 = vcmp.eq.s32.totalorder %v3880_v26, 0  ;;  %vm976_vm12 = vcmp.eq.s32.totalorder %v3880_v26, 4 }
 0x944   :  { %v867_v27 = vsel %vm768_vm10, 1, %v3284_v2  ;;  %v236_v29 = vsel %vm122_vm11, 1, %v3284_v2  ;;  %vm560_vm13 = vcmp.eq.s32.totalorder %v3880_v26, 2  ;;  %v1075_v30 = vsel %vm976_vm12, 1, %v3284_v2 }
 0x945   :  { %v1473_v31 = vpop.f32.mrb[12].mxu0  ;;  %vm1392_vm14 = vcmp.eq.s32.totalorder %v3880_v26, 6  ;;  %v659_v33 = vsel %vm560_vm13, 1, %v3284_v2  ;;  %vm1184_vm15 = vcmp.eq.s32.totalorder %v3880_v26, 5  ;;  %vm1600_vm0 = vcmp.eq.s32.totalorder %v3880_v26, 7 }
 0x946   :  { %v1477_v50 = vmax.f32 %v1473_v31, 1e-37  ;;  %v2642_v53 = vpop.f32.mrb[13].mxu0  ;;  %v1491_v34 = vsel %vm1392_vm14, 1, %v3284_v2  ;;  %v1283_v37 = vsel %vm1184_vm15, 1, %v3284_v2  ;;  %v1699_v39 = vsel %vm1600_vm0, 1, %v3284_v2 }
 0x947   :  { %v245_v53 = vpop.xlane.xlu0 %244 }
 0x948   :  { %3173 = vlog2.f32 %v1477_v50 }
 0x952   :  { %v3174_v59 = vpop.eup %3173 }
 0x953   :  { %v1481_v4 = vmul.f32 0.6931472, %v3174_v59  ;;  %v335_v59 = vld [vmem:[#allocation5] sm:$0xff] }
 0x955   :  { %v3859_v6 = vadd.f32 %v1481_v4, %v1479_v63 }
 0x957   :  { %1610 = vmax.xlane.f32.xlu1 %v3859_v6 }
 0x95b   :  { %328 = vadd.xlane.f32.xlu1 %v327_v9  ;;  %v1878_v9 = vsel %vm1877_vm2, 1.0, %v3283_v1  ;;  %vm1887_vm2 = vcmp.gt.s32.totalorder %v3877_v45, 3 }
 0x95f   :  { %v736_v14 = vpop.f32.mrb[4].mxu1  ;;  %534 = vadd.xlane.f32.xlu1 %v533_v10  ;;  %v538_v10 = vpop.xlane.xlu0 %537 }
 0x960   :  { %v740_v15 = vadd.f32 %v3494_v61, %v736_v14  ;;  %v2397_v18 = vpop.f32.mrb[5].mxu1  ;;  %v451_v61 = vsel %vm352_vm9, 1, %v3284_v2  ;;  %v1891_v2 = vsel %vm972_vm5, 1.0, %v3283_v1 }
 0x961   :  { %v1160_v55 = vmul.f32 %v1891_v2, %v3684_v60  ;;  %v542_v18 = vsel %vm352_vm9, %v538_v10, 0.0 }
 0x962   :  { %v741_v21 = vmul.f32 %v1881_v12, %v740_v15 }
 0x963   :  { %745 = vadd.xlane.f32.xlu1 %v744_v20 }
 0x964   :  { %742 = vadd.xlane.f32.xlu0 %v741_v21 }
 0x974   :  { %453 = vperm.xlu1 %3147, %v451_v61  }
 0x978   :  { %869 = vperm.xlu1 %3147, %v867_v27  }
 0x97a   :  { %238 = vperm.xlu0 %3148, %v236_v29  }
 0x97c   :  { %1077 = vperm.xlu1 %3147, %v1075_v30   ;;  %v1883_v30 = vsel %vm1882_vm3, 1.0, %v3283_v1  ;;  %vm1892_vm3 = vcmp.gt.s32.totalorder %v3877_v45, 4 }
 0x97e   :  { %661 = vperm.xlu0 %3148, %v659_v33   ;;  %v1905_v33 = vld [vmem:[%s4044_s1 + $0x38] sm:$0xff] }
 0x97f   :  { %v944_v36 = vpop.f32.mrb[6].mxu1 }
 0x980   :  { %v2467_v38 = vpop.f32.mrb[7].mxu1  ;;  %1493 = vperm.xlu1 %3147, %v1491_v34   ;;  %v948_v46 = vadd.f32 %v3523_v17, %v944_v36  ;;  %v1368_v17 = vmul.f32 %v1896_v57, %v3684_v60 }
 0x982   :  { %1285 = vperm.xlu0 %3148, %v1283_v37   ;;  %v949_v52 = vmul.f32 %v1886_v41, %v948_v46 }
 0x984   :  { %1701 = vperm.xlu1 %3147, %v1699_v39  }
 0x99f   :  { %v1152_v42 = vpop.f32.mrb[8].mxu1 }
 0x9a0   :  { %v2537_v44 = vpop.f32.mrb[9].mxu1  ;;  %v1156_v49 = vadd.f32 %v3552_v35, %v1152_v42  ;;  %v1901_v35 = vsel %vm1388_vm7, 1.0, %v3283_v1 }
 0x9a1   :  { %953 = vadd.xlane.f32.xlu0 %v952_v43  ;;  %v1576_v58 = vmul.f32 %v1901_v35, %v3684_v60 }
 0x9a2   :  { %v1157_v54 = vmul.f32 %v1891_v2, %v1156_v49 }
 0x9a8   :  { %950 = vadd.xlane.f32.xlu1 %v949_v52 }
 0x9ac   :  { %1158 = vadd.xlane.f32.xlu1 %v1157_v54 }
 0x9b0   :  { %1161 = vadd.xlane.f32.xlu1 %v1160_v55 }
 0x9b4   :  { %1369 = vadd.xlane.f32.xlu1 %v1368_v17 }
 0x9b8   :  { %1577 = vadd.xlane.f32.xlu1 %v1576_v58  ;;  %v1888_v58 = vsel %vm1887_vm2, 1.0, %v3283_v1 }
 0x9bf   :  { %v1360_v62 = vpop.f32.mrb[10].mxu1 }
 0x9c0   :  { %v1364_v0 = vadd.f32 %v3635_v23, %v1360_v62  ;;  %v2607_v11 = vpop.f32.mrb[11].mxu1  ;;  %v330_v23 = vsel %vm101_vm1, %v245_v53, 0.0 }
 0x9c2   :  { %v1365_v13 = vmul.f32 %v1896_v57, %v1364_v0 }
 0x9c4   :  { %1366 = vadd.xlane.f32.xlu0 %v1365_v13 }
 0x9df   :  { %v1568_v16 = vpop.f32.mrb[12].mxu1 }
 0x9e0   :  { %v1572_v19 = vadd.f32 %v3854_v3, %v1568_v16  ;;  %v2677_v25 = vpop.f32.mrb[13].mxu1 }
 0x9e2   :  { %v1573_v28 = vmul.f32 %v1901_v35, %v1572_v19 }
 0x9e4   :  { %1574 = vadd.xlane.f32.xlu0 %v1573_v28  ;;  %v3938_v31 = vpop.xlane.xlu1 %1610 }
 0x9e5   :  { %v1612_v22 = vsub.f32 %v3859_v6, %v3938_v31 }
 0x9e7   :  { %v1613_v50 = vmul.f32 1.442695, %v1612_v22 }
 0x9e8   :  { %v329_v56 = vpop.xlane.xlu1 %328 }
 0x9e9   :  { %3175 = vpow2.f32 %v1613_v50  ;;  %v333_v3 = vsel %vm122_vm11, %v329_v56, 0.0 }
 0x9ea   :  { %v334_v63 = vadd.f32 %v333_v3, %v330_v23 }
 0x9ec   :  { %v336_v4 = vadd.f32 %v335_v59, %v334_v63  ;;  %v535_v8 = vpop.xlane.xlu1 %534 }
 0x9ed   :  { %v540_v12 = vmul.f32 %v1878_v9, %v535_v8 }
 0x9ee   :  { %338 = vst.msk [vmem:[#allocation5] sm:$0xff] %vm109_vm8, %v336_v4 }
 0x9ef   :  { %v543_v20 = vadd.f32 %v542_v18, %v540_v12 }
 0x9f0   :  { %v746_v14 = vpop.xlane.xlu1 %745 }
 0x9f1   :  { %v743_v27 = vpop.xlane.xlu0 %742  ;;  %v750_v38 = vsel %vm560_vm13, %v746_v14, 0.0 }
 0x9f2   :  { %v748_v37 = vmul.f32 %v1883_v30, %v743_v27 }
 0x9f3   :  { %v3176_v15 = vpop.eup %3175 }
 0x9f4   :  { %2711 = vmatmul.mubr.f32.vlgmr.msra.gmra.mrb[14].mxu0 %v3176_v15  ;;  %v454_v21 = vpop.permute.xlu1 %453  ;;  %v751_v44 = vadd.f32 %v750_v38, %v748_v37 }
 0x9f5   :  { %v544_v61 = vld [vmem:[#allocation5] sm:$0xff]  ;;  %vm455_vm5 = vcmp.eq.s32.totalorder %v454_v21, 1 }
 0x9f6   :  { %v545_v29 = vadd.f32 %v544_v61, %v543_v20 }
 0x9f8   :  { %546 = vst.msk [vmem:[#allocation5] sm:$0xff] %vm109_vm8, %v545_v29  ;;  %v870_v34 = vpop.permute.xlu1 %869 }
 0x9f9   :  { %v239_v36 = vpop.permute.xlu0 %238  ;;  %vm871_vm7 = vcmp.eq.s32.totalorder %v870_v34, 1 }
 0x9fa   :  { %vm240_vm4 = vcmp.eq.s32.totalorder %v239_v36, 1  ;;  %1594 = vperm.xlu0 %3148, %v1905_v33   ;;  %v1904_v33 = vld [vmem:[%s4045_s2 + $0x38] sm:$0xff]  ;;  %s3288_s2 = smov [#allocation12]  }
 0x9fb   :  { %v241_v39 = vsel %vm240_vm4, %v3378_v7, 0.0  ;;  %v1686_v34 = vadd.f32 %v1904_v33, %v3938_v31  ;;  %vm1907_vm4 = vcmp.gt.s32.totalorder %v3877_v45, 7  ;;  %s1844_s21 = sshll.u32 %s3288_s2, 4  ;;  %s1845_s21 = int_to_ptr.vmem [resolvable:$true] %s1844_s21 }
 0x9fc   :  { %v456_v41 = vsel %vm455_vm5, %v3463_v51, %v241_v39  ;;  %v1078_v42 = vpop.permute.xlu1 %1077  ;;  %s3227_s26 = scalar_lea.vmem %s1845_s21, 16  ;;  %s3231_s27 = scalar_lea.vmem %s1845_s21, 32 }
 0x9fd   :  { %v662_v43 = vpop.permute.xlu0 %661  ;;  %vm1079_vm9 = vcmp.eq.s32.totalorder %v1078_v42, 1  ;;  %v1687_v37 = vadd.f32 %v1686_v34, %v3460_v47  ;;  %p3228_p2 = scmp.ne.s32.totalorder %s1845_s21, %s3227_s26  ;;  %p3232_p3 = scmp.lt.s32.totalorder %s1845_s21, %s1845_s21 }
 0x9fe   :  { %vm663_vm6 = vcmp.eq.s32.totalorder %v662_v43, 1  ;;  %p3233_p4 = scmp.lt.s32.totalorder %s3231_s27, %s3227_s26 }
 0x9ff   :  { %v752_v46 = vld [vmem:[#allocation5] sm:$0xff]  ;;  %v664_v49 = vsel %vm663_vm6, %v3498_v5, %v456_v41  ;;  %v3963_v52 = vpop.f32.mrb[14].mxu1 }
 0xa00   :  { %v753_v2 = vadd.f32 %v752_v46, %v751_v44  ;;  %v872_v54 = vsel %vm871_vm7, %v3527_v24, %v664_v49  ;;  %v1494_v55 = vpop.permute.xlu1 %1493  ;;  %v2747_v57 = vpop.f32.mrb[15].mxu1  ;;  %v1780_v46 = vadd.f32 %v1904_v33, %v3963_v52  ;;  %p3234_p5 = por %p3233_p4, %p3232_p3 }
 0xa01   :  { %vm1495_vm11 = vcmp.eq.s32.totalorder %v1494_v55, 1  ;;  %v1080_v7 = vsel %vm1079_vm9, %v3556_v40, %v872_v54  ;;  %v1286_v51 = vpop.permute.xlu0 %1285 }
 0xa02   :  { %754 = vst.msk [vmem:[#allocation5] sm:$0xff] %vm109_vm8, %v753_v2  ;;  %vm1287_vm13 = vcmp.eq.s32.totalorder %v1286_v51, 1  ;;  %p3235_p6 = pnand %p3234_p5, %p3228_p2 }
 0xa03   :  { %v1288_v17 = vsel %vm1287_vm13, %v3640_v32, %v1080_v7  ;;  %v1893_v32 = vsel %vm1892_vm3, 1.0, %v3283_v1 }
 0xa04   :  { %v1496_v35 = vsel %vm1495_vm11, %v3859_v6, %v1288_v17  ;;  %v1702_v5 = vpop.permute.xlu1 %1701 }
 0xa09   :  { %v960_v13 = vld [vmem:[#allocation5] sm:$0xff] }
 0xa2e   :  { %v954_v62 = vpop.xlane.xlu0 %953 }
 0xa2f   :  { %v958_v11 = vsel %vm768_vm10, %v954_v62, 0.0  ;;  %vm1897_vm10 = vcmp.gt.s32.totalorder %v3877_v45, 5 }
 0xa30   :  { %v1898_v56 = vsel %vm1897_vm10, 1.0, %v3283_v1 }
 0xa35   :  { %v951_v24 = vpop.xlane.xlu1 %950 }
 0xa36   :  { %v956_v0 = vmul.f32 %v1888_v58, %v951_v24 }
 0xa38   :  { %v959_v40 = vadd.f32 %v958_v11, %v956_v0 }
 0xa39   :  { %v1159_v16 = vpop.xlane.xlu1 %1158 }
 0xa3a   :  { %v961_v19 = vadd.f32 %v960_v13, %v959_v40  ;;  %v1164_v28 = vmul.f32 %v1893_v32, %v1159_v16 }
 0xa3c   :  { %962 = vst.msk [vmem:[#allocation5] sm:$0xff] %vm109_vm8, %v961_v19 }
 0xa3d   :  { %v1162_v6 = vpop.xlane.xlu1 %1161 }
 0xa3e   :  { %v1166_v25 = vsel %vm976_vm12, %v1162_v6, 0.0  ;;  %vm1902_vm12 = vcmp.gt.s32.totalorder %v3877_v45, 6 }
 0xa3f   :  { %v1167_v22 = vadd.f32 %v1166_v25, %v1164_v28  ;;  %v1903_v10 = vsel %vm1902_vm12, 1.0, %v3283_v1 }
 0xa41   :  { %v1370_v23 = vpop.xlane.xlu1 %1369 }
 0xa42   :  { %v1374_v63 = vsel %vm1184_vm15, %v1370_v23, 0.0 }
 0xa43   :  { %v1168_v50 = vld [vmem:[#allocation5] sm:$0xff] }
 0xa44   :  { %v1169_v53 = vadd.f32 %v1168_v50, %v1167_v22 }
 0xa45   :  { %v1578_v12 = vpop.xlane.xlu1 %1577 }
 0xa46   :  { %1170 = vst.msk [vmem:[#allocation5] sm:$0xff] %vm109_vm8, %v1169_v53  ;;  %v1582_v18 = vsel %vm1392_vm14, %v1578_v12, 0.0  ;;  %vm1703_vm14 = vcmp.eq.s32.totalorder %v1702_v5, 1 }
 0xa4d   :  { %v1376_v8 = vld [vmem:[#allocation5] sm:$0xff] }
 0xa51   :  { %v1367_v59 = vpop.xlane.xlu0 %1366 }
 0xa52   :  { %v1372_v3 = vmul.f32 %v1898_v56, %v1367_v59 }
 0xa54   :  { %v1375_v4 = vadd.f32 %v1374_v63, %v1372_v3 }
 0xa56   :  { %v1377_v9 = vadd.f32 %v1376_v8, %v1375_v4 }
 0xa58   :  { %1378 = vst.msk [vmem:[#allocation5] sm:$0xff] %vm109_vm8, %v1377_v9 }
 0xa5f   :  { %v1584_v21 = vld [vmem:[#allocation5] sm:$0xff] }
 0xa71   :  { %v1575_v14 = vpop.xlane.xlu0 %1574 }
 0xa72   :  { %v1580_v15 = vmul.f32 %v1903_v10, %v1575_v14 }
 0xa74   :  { %v1583_v20 = vadd.f32 %v1582_v18, %v1580_v15 }
 0xa76   :  { %v1585_v61 = vadd.f32 %v1584_v21, %v1583_v20 }
 0xa78   :  { %1586 = vst.msk [vmem:[#allocation5] sm:$0xff] %vm109_vm8, %v1585_v61 }
 0xa79   :  { %v1595_v38 = vpop.permute.xlu0 %1594 }
 0xa7a   :  { %vm1596_vm15 = vcmp.eq.s32.totalorder %v3662_v48, %v1595_v38  ;;  %v1908_v48 = vsel %vm1907_vm4, 1.0, %v3283_v1 }
 0xa7b   :  { %v1906_v44 = vsel %vm1596_vm15, 1.0, %v3283_v1 }
 0xa7c   :  { %v1781_v49 = vmul.f32 %v1906_v44, %v1780_v46  ;;  %v1784_v31 = vmul.f32 %v1906_v44, %v3684_v60 }
 0xa7f   :  { %v1792_v17 = vld [vmem:[#allocation5] sm:$0xff] }
 0xac7   :  { %v1681_v27 = vpop.f32.mrb[14].mxu0 }
 0xac8   :  { %v1685_v29 = vmax.f32 %v1681_v27, 1e-37  ;;  %v2712_v30 = vpop.f32.mrb[15].mxu0 }
 0xaca   :  { %3177 = vlog2.f32 %v1685_v29 }
 0xad4   :  { %v3178_v36 = vpop.eup %3177 }
 0xad5   :  { %v1689_v39 = vmul.f32 0.6931472, %v3178_v36 }
 0xad7   :  { %v1690_v41 = vadd.f32 %v1689_v39, %v1687_v37 }
 0xad9   :  { %v1704_v42 = vsel %vm1703_vm14, %v1690_v41, %v1496_v35 }
 0xada   :  { %v1800_v43 = vadd.f32 %v3684_v60, %v1704_v42 }
 0xadc   :  { %1801 = vmax.xlane.f32.xlu1 %v1800_v43 }
 0xae0   :  { %1782 = vadd.xlane.f32.xlu1 %v1781_v49 }
 0xae4   :  { %1785 = vadd.xlane.f32.xlu1 %v1784_v31 }
 0xb69   :  { %v1802_v47 = vpop.xlane.xlu1 %1801 }
 0xb6a   :  { %v1803_v2 = vsub.f32 %v1800_v43, %v1802_v47 }
 0xb6c   :  { %v1804_v54 = vmul.f32 1.442695, %v1803_v2 }
 0xb6d   :  { %v1783_v55 = vpop.xlane.xlu1 %1782 }
 0xb6e   :  { %3179 = vpow2.f32 %v1804_v54  ;;  %v1788_v57 = vmul.f32 %v1908_v48, %v1783_v55 }
 0xb71   :  { %v1786_v7 = vpop.xlane.xlu1 %1785 }
 0xb72   :  { %v1790_v52 = vsel %vm1600_vm0, %v1786_v7, 0.0 }
 0xb73   :  { %v1791_v51 = vadd.f32 %v1790_v52, %v1788_v57 }
 0xb75   :  { %v1793_v35 = vadd.f32 %v1792_v17, %v1791_v51 }
 0xb77   :  { %1794 = vst.msk [vmem:[#allocation5] sm:$0xff] %vm109_vm8, %v1793_v35 }
 0xb78   :  { %v3180_v60 = vpop.eup %3179 }
 0xb79   :  { %1806 = vadd.xlane.f32.xlu1 %v3180_v60 }
 0xb7e   :  { %v1825_v5 = vld [vmem:[#allocation5] sm:$0xff] }
 0xb7f   :  { %v1826_v58 = vsel %vm109_vm8, %v1825_v5, 0.0 }
 0xb80   :  { %1827 = vadd.xlane.f32.xlu0 %v1826_v58 }
 0xc06   :  { %v1807_v62 = vpop.xlane.xlu1 %1806 }
 0xc07   :  { %3181 = vlog2.f32 %v1807_v62 }
 0xc0d   :  { %v1828_v40 = vpop.xlane.xlu0 %1827 }
 0xc0e   :  { %v1829_v13 = vrot.slane %v1828_v40, 4 }
 0xc10   :  { %v1830_v16 = vadd.f32 %v1829_v13, %v1828_v40 }
 0xc11   :  { %v3182_v24 = vpop.eup %3181 }
 0xc12   :  { %v1809_v1 = vmul.f32 0.6931472, %v3182_v24  ;;  %v1831_v19 = vrot.slane %v1830_v16, 2 }
 0xc14   :  { %v1810_v0 = vadd.f32 %v1809_v1, %v1802_v47  ;;  %v1832_v28 = vadd.f32 %v1831_v19, %v1830_v16 }
 0xc16   :  { %v1811_v26 = vsel %vm101_vm1, %v1810_v0, 0.0  ;;  %v1833_v53 = vrot.slane %v1832_v28, 1 }
 0xc17   :  { %v1812_v11 = vsel %vm109_vm8, %v1811_v26, 0.0  ;;  %vm1823_vm8 = vcmask 0  }
 0xc18   :  { %1813 = vadd.xlane.f32.xlu1 %v1812_v11  ;;  %v1834_v59 = vadd.f32 %v1833_v53, %v1832_v28 }
 0xca5   :  { %v1814_v32 = vpop.xlane.xlu1 %1813 }
 0xca6   :  { %v1815_v6 = vrot.slane %v1814_v32, 4 }
 0xca8   :  { %v1816_v25 = vadd.f32 %v1815_v6, %v1814_v32 }
 0xcaa   :  { %v1817_v22 = vrot.slane %v1816_v25, 2 }
 0xcac   :  { %v1818_v50 = vadd.f32 %v1817_v22, %v1816_v25 }
 0xcae   :  { %v1819_v56 = vrot.slane %v1818_v50, 1 }
 0xcb0   :  { %v1820_v23 = vadd.f32 %v1819_v56, %v1818_v50 }
 0xcb2   :  { %3132 = vpush %v1820_v23 }
 0xcb3   :  { %3134 = vpush %v1834_v59 }
 0xce3   :  { %s3133_s24 = spop %3132 }
 0xce4   :  { %v1822_v45 = vstv %s3133_s24  ;;  %s3135_s25 = spop %3134 }
 0xce5   :  { %v1836_v3 = vstv %s3135_s25  ;;  %1824 = vst.msk [vmem:[#allocation12] sm:$0x1] %vm1823_vm8, %v1822_v45 }
 0xce6   :  { %3238 = shalt.err (!%p3235_p6)
}
 0xce7   :  { %s3239_s30 = scalar_lea.hbm %s4051_s8, 16 }
 0xce8   :  { %p3240_p7 = scmp.ne.s32.totalorder %s4051_s8, %s3239_s30  ;;  %p3243_p8 = scmp.lt.u32.totalorder %s3239_s30, %s4051_s8 }
 0xcea   :  { %p3245_p9 = pnand %p3243_p8, %p3240_p7 }
 0xcec   :  { %3248 = shalt.err (!%p3245_p9)
}
 0xced   :  { %1847 = dma.vmem_to_hbm [thread:$0]  %s1845_s21, 16, %s4051_s8, [#allocation9]   ;;  %1837 = vst.msk [vmem:[#allocation13] sm:$0x1] %vm1823_vm8, %v1836_v3 }
 0xcee   :  { %s3249_s15 = scalar_lea.vmem %s4009_s23, 16  ;;  %s3253_s4 = scalar_lea.vmem %s4009_s23, 32 }
 0xcef   :  { %p3250_p10 = scmp.ne.s32.totalorder %s4009_s23, %s3249_s15  ;;  %p3254_p11 = scmp.lt.s32.totalorder %s4009_s23, %s4009_s23 }
 0xcf0   :  { %p3255_p12 = scmp.lt.s32.totalorder %s3253_s4, %s3249_s15 }
 0xcf2   :  { %p3256_p13 = por %p3255_p12, %p3254_p11 }
 0xcf4   :  { %p3257_p0 = pnand %p3256_p13, %p3250_p10 }
 0xcf6   :  { %3260 = shalt.err (!%p3257_p0)
}
 0xcf7   :  { %s3261_s6 = scalar_lea.hbm %s4052_s9, 16 }
 0xcf8   :  { %p3262_p1 = scmp.ne.s32.totalorder %s4052_s9, %s3261_s6  ;;  %p3265_p2 = scmp.lt.u32.totalorder %s3261_s6, %s4052_s9 }
 0xcfa   :  { %p3267_p3 = pnand %p3265_p2, %p3262_p1 }
 0xcfc   :  { %3270 = shalt.err (!%p3267_p3)
}
 0xcfd   :  { %1857 = dma.vmem_to_hbm [thread:$0]  %s4009_s23, 16, %s4052_s9, [#allocation14]  }
 0xcfe   :  { %3275 = dma.done.wait [#allocation9], 16  }
 0xcff   :  { %3276 = vsyncadd [#allocation9], 4294967280 }
 0xd00   :  { %3277 = dma.done.wait [#allocation14], 16  }
 0xd01   :  { %3278 = vsyncadd [#allocation14], 4294967280 }
 0xd02   :  { %1864 = vsyncpa [#allocation8], 1 }
 0xd03   :  { %1865 = vsyncpa [#allocation11], 1 }
 0xd04   :  { %1866 = vsyncpa [#allocation9], 1 }
 0xd05   :  { %1867 = vsyncpa [#allocation14], 1 }

</bundles_post_ra>
